<compile_context>
chip_gen: v7x
topology: tpu7x:2x2x1
jax: 0.10.0
libtpu: 0.0.40
codegen_flags: <defaults>
</compile_context>

<pallas_src>
import jax
import jax.numpy as jnp
from jax import lax
from jax.experimental import pallas as pl
from jax.experimental.pallas import tpu as pltpu


# ------------------------------ fused kernel ------------------------------- #

def _make_fused_kernel(B, H, W, Cin, Cout, KH, KW, mxu_dtype):
    HW = H * W
    M = B * HW
    dn = (((1,), (1,)), ((), ()))   # contract the last dim of both operands ('xd,yd->xy')

    def kernel(x_ref, wt_ref, bc_ref, wf_ref, bf_ref, o_ref):
        # ---- conv: KH*KW accumulated taps, computed transposed (lane-dense) ----
        acc = jnp.zeros((Cout, M), jnp.float32)
        for kh in range(KH):
            for kw in range(KW):
                t = kh * KW + kw
                slab = x_ref[:, kh:kh + H, kw:kw + W, :]          # [B, H, W, Cin]
                slab = slab.reshape(M, Cin).astype(mxu_dtype)     # [B*H*W, Cin]
                acc = acc + lax.dot_general(
                    wt_ref[t], slab, dn,
                    preferred_element_type=jnp.float32)           # [Cout, B*H*W]
        # bias + ReLU epilogue in f32 on the VPU
        h = jnp.maximum(acc + bc_ref[...], 0.0)                   # [Cout, B*H*W]

        # ---- CHW flatten (== PyTorch nn.Flatten on NCHW), lane-aligned ----
        rows = []
        for b in range(B):
            segs = [h[c:c + 1, b * HW:(b + 1) * HW] for c in range(Cout)]
            rows.append(jnp.concatenate(segs, axis=1))            # [1, Cout*H*W]
        flat = jnp.concatenate(rows, axis=0)                      # [B, Cout*H*W]

        # ---- dense head (f32) ----
        q = lax.dot_general(flat, wf_ref[...], dn,
                            preferred_element_type=jnp.float32)   # [B, n_actions]
        o_ref[...] = q + bf_ref[...]

    return kernel


# --------------------------- one-time param prep ---------------------------- #

def prepare_params(params, mxu_dtype=jnp.float32):
    """Hoisted layout prep: do this once at init, not per forward call."""
    w_conv = params["w_conv"]                                  # [Cout, Cin, KH, KW] (OIHW)
    Cout, Cin, KH, KW = w_conv.shape
    # per-tap weights [KH*KW, Cout, Cin] so tap t is a free leading index in-kernel
    w_taps = jnp.transpose(w_conv, (2, 3, 0, 1)).reshape(KH * KW, Cout, Cin)
    return {
        "w_taps": w_taps.astype(mxu_dtype),                    # MXU operand dtype
        "b_conv": params["b_conv"].reshape(Cout, 1).astype(jnp.float32),
        "w_fc": params["w_fc"].astype(jnp.float32),            # [A, Cout*H*W], CHW order as-is
        "b_fc": params["b_fc"].reshape(1, -1).astype(jnp.float32),
    }


# ------------------------------- forward pass ------------------------------- #

def conv_qnetwork_forward(states_nhwc, prepped):
    """states_nhwc: [B, H, W, Cin] float32 (the HWC observations the torch
    module receives before it transposes them to NCHW)."""
    B, H, W, Cin = states_nhwc.shape
    w_taps = prepped["w_taps"]
    b_conv = prepped["b_conv"]
    w_fc = prepped["w_fc"]
    b_fc = prepped["b_fc"]

    n_taps, Cout, Cin_w = w_taps.shape
    assert Cin_w == Cin and n_taps == 9, "kernel assumes the default 3x3/s1/p1 conv"
    KH = KW = 3
    n_actions = w_fc.shape[0]
    mxu_dtype = w_taps.dtype

    # Only glue left outside the kernel: zero-pad the input (tiny, ~10 KB).
    x_pad = jnp.pad(states_nhwc.astype(jnp.float32),
                    ((0, 0), (1, 1), (1, 1), (0, 0)))

    kernel = _make_fused_kernel(B, H, W, Cin, Cout, KH, KW, mxu_dtype)

    def full(shape):
        return pl.BlockSpec(tuple(shape), lambda i: (0,) * len(shape))

    return pl.pallas_call(
        kernel,
        out_shape=jax.ShapeDtypeStruct((B, n_actions), jnp.float32),
        grid=(1,),
        in_specs=[full(x_pad.shape), full(w_taps.shape), full(b_conv.shape),
                  full(w_fc.shape), full(b_fc.shape)],
        out_specs=full((B, n_actions)),
        compiler_params=pltpu.CompilerParams(dimension_semantics=("arbitrary",)),
    )(x_pad, w_taps, b_conv, w_fc, b_fc)


# ------------------------------ reference (JAX) ----------------------------- #

def reference_forward(states_nhwc, params):
    x = jnp.transpose(states_nhwc, (0, 3, 1, 2))  # NCHW, as the torch module does
    y = lax.conv_general_dilated(
        x, params["w_conv"], window_strides=(1, 1), padding=((1, 1), (1, 1)),
        dimension_numbers=("NCHW", "OIHW", "NCHW"),
        precision=lax.Precision.HIGHEST,
    )
    y = jnp.maximum(y + params["b_conv"][None, :, None, None], 0.0)
    flat = y.reshape(y.shape[0], -1)  # CHW flatten (PyTorch nn.Flatten on NCHW)
    return (
        jnp.dot(flat, params["w_fc"].T, precision=lax.Precision.HIGHEST)
        + params["b_fc"]
    )


# ----------------------------------- main ----------------------------------- #

if __name__ == "__main__":
    B, H, W, Cin = 2, 16, 16, 4     # env.observation_space.shape == (H, W, Cin)
    Cout, K = 8, 3                  # default conv_layers
    n_actions = 6                   # env.action_space.n
    flat = Cout * H * W

    key = jax.random.PRNGKey(0)
    kx, kwc, kbc, kwf, kbf = jax.random.split(key, 5)

    # deterministic PyTorch-style uniform(-1/sqrt(fan_in), 1/sqrt(fan_in)) init
    conv_bound = 1.0 / jnp.sqrt(jnp.float32(Cin * K * K))
    fc_bound = 1.0 / jnp.sqrt(jnp.float32(flat))
    params = {
        "w_conv": jax.random.uniform(kwc, (Cout, Cin, K, K), jnp.float32,
                                     -conv_bound, conv_bound),
        "b_conv": jax.random.uniform(kbc, (Cout,), jnp.float32,
                                     -conv_bound, conv_bound),
        "w_fc": jax.random.uniform(kwf, (n_actions, flat), jnp.float32,
                                   -fc_bound, fc_bound),
        "b_fc": jax.random.uniform(kbf, (n_actions,), jnp.float32,
                                   -fc_bound, fc_bound),
    }

    states = jax.random.normal(kx, (B, H, W, Cin), jnp.float32)
    q_ref = jax.block_until_ready(reference_forward(states, params))

    # f32 MXU operands: tight parity with the f32 reference.
    prepped_f32 = prepare_params(params, jnp.float32)
    q = jax.block_until_ready(conv_qnetwork_forward(states, prepped_f32))
    assert q.shape == (B, n_actions)
    assert jnp.allclose(q, q_ref, atol=2e-3, rtol=2e-3), (q, q_ref)

    # bf16 conv MXU operands (v6e/v7x native MXU dtype), f32 accumulation/epilogue.
    prepped_bf16 = prepare_params(params, jnp.bfloat16)
    q_bf16 = jax.block_until_ready(conv_qnetwork_forward(states, prepped_bf16))
    assert q_bf16.shape == (B, n_actions)
    assert jnp.allclose(q_bf16, q_ref, atol=2e-2, rtol=2e-2), (q_bf16, q_ref)

    print("KERNEL_OK")
</pallas_src>

<mosaic_0001>
module attributes {stable_mosaic.version = 11 : i64} {
  func.func @kernel(%arg0: i32, %arg1: memref<2x18x18x4xf32, #tpu.memory_space<vmem>>, %arg2: memref<9x8x4xf32, #tpu.memory_space<vmem>>, %arg3: memref<8x1xf32, #tpu.memory_space<vmem>>, %arg4: memref<6x2048xf32, #tpu.memory_space<vmem>>, %arg5: memref<1x6xf32, #tpu.memory_space<vmem>>, %arg6: memref<2x6xf32, #tpu.memory_space<vmem>>) attributes {dimension_semantics = [#tpu.dimension_semantics<arbitrary>], iteration_bounds = array<i64: 1>, scalar_prefetch = 0 : i64, scratch_operands = 0 : i64, tpu.core_type = #tpu.core_type<tc>, window_params = [{pipeline_mode = #tpu.pipeline_mode<synchronous>, transform_indices = @transform_0, window_bounds = array<i64: 2, 18, 18, 4>}, {pipeline_mode = #tpu.pipeline_mode<synchronous>, transform_indices = @transform_1, window_bounds = array<i64: 9, 8, 4>}, {pipeline_mode = #tpu.pipeline_mode<synchronous>, transform_indices = @transform_2, window_bounds = array<i64: 8, 1>}, {pipeline_mode = #tpu.pipeline_mode<synchronous>, transform_indices = @transform_3, window_bounds = array<i64: 6, 2048>}, {pipeline_mode = #tpu.pipeline_mode<synchronous>, transform_indices = @transform_4, window_bounds = array<i64: 1, 6>}, {pipeline_mode = #tpu.pipeline_mode<synchronous>, transform_indices = @transform_5, window_bounds = array<i64: 2, 6>}]} {
    %cst = arith.constant 0.000000e+00 : f32
    %0 = vector.broadcast %cst : f32 to vector<8x512xf32>
    %c0 = arith.constant 0 : index
    %c0_0 = arith.constant 0 : index
    %c0_1 = arith.constant 0 : index
    %c0_2 = arith.constant 0 : index
    %1 = vector.load %arg1[%c0, %c0_0, %c0_1, %c0_2] : memref<2x18x18x4xf32, #tpu.memory_space<vmem>>, vector<2x16x16x4xf32>
    %2 = vector.shape_cast %1 : vector<2x16x16x4xf32> to vector<512x4xf32>
    %c0_3 = arith.constant 0 : index
    %c0_4 = arith.constant 0 : index
    %c0_5 = arith.constant 0 : index
    %3 = vector.load %arg2[%c0_3, %c0_4, %c0_5] : memref<9x8x4xf32, #tpu.memory_space<vmem>>, vector<1x8x4xf32>
    %4 = vector.shape_cast %3 : vector<1x8x4xf32> to vector<8x4xf32>
    %cst_6 = arith.constant dense<0.000000e+00> : vector<8x512xf32>
    %5 = tpu.matmul %4, %2, %cst_6 {dimension_numbers = #tpu.dot_dimension_numbers<[1], [1], [0], [0], [0, 0, 1, 0], [], []>} : vector<8x4xf32>, vector<512x4xf32>, vector<8x512xf32> -> vector<8x512xf32>
    %6 = arith.addf %0, %5 : vector<8x512xf32>
    %c0_7 = arith.constant 0 : index
    %c0_8 = arith.constant 0 : index
    %c1 = arith.constant 1 : index
    %c0_9 = arith.constant 0 : index
    %7 = vector.load %arg1[%c0_7, %c0_8, %c1, %c0_9] : memref<2x18x18x4xf32, #tpu.memory_space<vmem>>, vector<2x16x16x4xf32>
    %8 = vector.shape_cast %7 : vector<2x16x16x4xf32> to vector<512x4xf32>
    %c1_10 = arith.constant 1 : index
    %c0_11 = arith.constant 0 : index
    %c0_12 = arith.constant 0 : index
    %9 = vector.load %arg2[%c1_10, %c0_11, %c0_12] : memref<9x8x4xf32, #tpu.memory_space<vmem>>, vector<1x8x4xf32>
    %10 = vector.shape_cast %9 : vector<1x8x4xf32> to vector<8x4xf32>
    %cst_13 = arith.constant dense<0.000000e+00> : vector<8x512xf32>
    %11 = tpu.matmul %10, %8, %cst_13 {dimension_numbers = #tpu.dot_dimension_numbers<[1], [1], [0], [0], [0, 0, 1, 0], [], []>} : vector<8x4xf32>, vector<512x4xf32>, vector<8x512xf32> -> vector<8x512xf32>
    %12 = arith.addf %6, %11 : vector<8x512xf32>
    %c0_14 = arith.constant 0 : index
    %c0_15 = arith.constant 0 : index
    %c2 = arith.constant 2 : index
    %c0_16 = arith.constant 0 : index
    %13 = vector.load %arg1[%c0_14, %c0_15, %c2, %c0_16] : memref<2x18x18x4xf32, #tpu.memory_space<vmem>>, vector<2x16x16x4xf32>
    %14 = vector.shape_cast %13 : vector<2x16x16x4xf32> to vector<512x4xf32>
    %c2_17 = arith.constant 2 : index
    %c0_18 = arith.constant 0 : index
    %c0_19 = arith.constant 0 : index
    %15 = vector.load %arg2[%c2_17, %c0_18, %c0_19] : memref<9x8x4xf32, #tpu.memory_space<vmem>>, vector<1x8x4xf32>
    %16 = vector.shape_cast %15 : vector<1x8x4xf32> to vector<8x4xf32>
    %cst_20 = arith.constant dense<0.000000e+00> : vector<8x512xf32>
    %17 = tpu.matmul %16, %14, %cst_20 {dimension_numbers = #tpu.dot_dimension_numbers<[1], [1], [0], [0], [0, 0, 1, 0], [], []>} : vector<8x4xf32>, vector<512x4xf32>, vector<8x512xf32> -> vector<8x512xf32>
    %18 = arith.addf %12, %17 : vector<8x512xf32>
    %c0_21 = arith.constant 0 : index
    %c1_22 = arith.constant 1 : index
    %c0_23 = arith.constant 0 : index
    %c0_24 = arith.constant 0 : index
    %19 = vector.load %arg1[%c0_21, %c1_22, %c0_23, %c0_24] : memref<2x18x18x4xf32, #tpu.memory_space<vmem>>, vector<2x16x16x4xf32>
    %20 = vector.shape_cast %19 : vector<2x16x16x4xf32> to vector<512x4xf32>
    %c3 = arith.constant 3 : index
    %c0_25 = arith.constant 0 : index
    %c0_26 = arith.constant 0 : index
    %21 = vector.load %arg2[%c3, %c0_25, %c0_26] : memref<9x8x4xf32, #tpu.memory_space<vmem>>, vector<1x8x4xf32>
    %22 = vector.shape_cast %21 : vector<1x8x4xf32> to vector<8x4xf32>
    %cst_27 = arith.constant dense<0.000000e+00> : vector<8x512xf32>
    %23 = tpu.matmul %22, %20, %cst_27 {dimension_numbers = #tpu.dot_dimension_numbers<[1], [1], [0], [0], [0, 0, 1, 0], [], []>} : vector<8x4xf32>, vector<512x4xf32>, vector<8x512xf32> -> vector<8x512xf32>
    %24 = arith.addf %18, %23 : vector<8x512xf32>
    %c0_28 = arith.constant 0 : index
    %c1_29 = arith.constant 1 : index
    %c1_30 = arith.constant 1 : index
    %c0_31 = arith.constant 0 : index
    %25 = vector.load %arg1[%c0_28, %c1_29, %c1_30, %c0_31] : memref<2x18x18x4xf32, #tpu.memory_space<vmem>>, vector<2x16x16x4xf32>
    %26 = vector.shape_cast %25 : vector<2x16x16x4xf32> to vector<512x4xf32>
    %c4 = arith.constant 4 : index
    %c0_32 = arith.constant 0 : index
    %c0_33 = arith.constant 0 : index
    %27 = vector.load %arg2[%c4, %c0_32, %c0_33] : memref<9x8x4xf32, #tpu.memory_space<vmem>>, vector<1x8x4xf32>
    %28 = vector.shape_cast %27 : vector<1x8x4xf32> to vector<8x4xf32>
    %cst_34 = arith.constant dense<0.000000e+00> : vector<8x512xf32>
    %29 = tpu.matmul %28, %26, %cst_34 {dimension_numbers = #tpu.dot_dimension_numbers<[1], [1], [0], [0], [0, 0, 1, 0], [], []>} : vector<8x4xf32>, vector<512x4xf32>, vector<8x512xf32> -> vector<8x512xf32>
    %30 = arith.addf %24, %29 : vector<8x512xf32>
    %c0_35 = arith.constant 0 : index
    %c1_36 = arith.constant 1 : index
    %c2_37 = arith.constant 2 : index
    %c0_38 = arith.constant 0 : index
    %31 = vector.load %arg1[%c0_35, %c1_36, %c2_37, %c0_38] : memref<2x18x18x4xf32, #tpu.memory_space<vmem>>, vector<2x16x16x4xf32>
    %32 = vector.shape_cast %31 : vector<2x16x16x4xf32> to vector<512x4xf32>
    %c5 = arith.constant 5 : index
    %c0_39 = arith.constant 0 : index
    %c0_40 = arith.constant 0 : index
    %33 = vector.load %arg2[%c5, %c0_39, %c0_40] : memref<9x8x4xf32, #tpu.memory_space<vmem>>, vector<1x8x4xf32>
    %34 = vector.shape_cast %33 : vector<1x8x4xf32> to vector<8x4xf32>
    %cst_41 = arith.constant dense<0.000000e+00> : vector<8x512xf32>
    %35 = tpu.matmul %34, %32, %cst_41 {dimension_numbers = #tpu.dot_dimension_numbers<[1], [1], [0], [0], [0, 0, 1, 0], [], []>} : vector<8x4xf32>, vector<512x4xf32>, vector<8x512xf32> -> vector<8x512xf32>
    %36 = arith.addf %30, %35 : vector<8x512xf32>
    %c0_42 = arith.constant 0 : index
    %c2_43 = arith.constant 2 : index
    %c0_44 = arith.constant 0 : index
    %c0_45 = arith.constant 0 : index
    %37 = vector.load %arg1[%c0_42, %c2_43, %c0_44, %c0_45] : memref<2x18x18x4xf32, #tpu.memory_space<vmem>>, vector<2x16x16x4xf32>
    %38 = vector.shape_cast %37 : vector<2x16x16x4xf32> to vector<512x4xf32>
    %c6 = arith.constant 6 : index
    %c0_46 = arith.constant 0 : index
    %c0_47 = arith.constant 0 : index
    %39 = vector.load %arg2[%c6, %c0_46, %c0_47] : memref<9x8x4xf32, #tpu.memory_space<vmem>>, vector<1x8x4xf32>
    %40 = vector.shape_cast %39 : vector<1x8x4xf32> to vector<8x4xf32>
    %cst_48 = arith.constant dense<0.000000e+00> : vector<8x512xf32>
    %41 = tpu.matmul %40, %38, %cst_48 {dimension_numbers = #tpu.dot_dimension_numbers<[1], [1], [0], [0], [0, 0, 1, 0], [], []>} : vector<8x4xf32>, vector<512x4xf32>, vector<8x512xf32> -> vector<8x512xf32>
    %42 = arith.addf %36, %41 : vector<8x512xf32>
    %c0_49 = arith.constant 0 : index
    %c2_50 = arith.constant 2 : index
    %c1_51 = arith.constant 1 : index
    %c0_52 = arith.constant 0 : index
    %43 = vector.load %arg1[%c0_49, %c2_50, %c1_51, %c0_52] : memref<2x18x18x4xf32, #tpu.memory_space<vmem>>, vector<2x16x16x4xf32>
    %44 = vector.shape_cast %43 : vector<2x16x16x4xf32> to vector<512x4xf32>
    %c7 = arith.constant 7 : index
    %c0_53 = arith.constant 0 : index
    %c0_54 = arith.constant 0 : index
    %45 = vector.load %arg2[%c7, %c0_53, %c0_54] : memref<9x8x4xf32, #tpu.memory_space<vmem>>, vector<1x8x4xf32>
    %46 = vector.shape_cast %45 : vector<1x8x4xf32> to vector<8x4xf32>
    %cst_55 = arith.constant dense<0.000000e+00> : vector<8x512xf32>
    %47 = tpu.matmul %46, %44, %cst_55 {dimension_numbers = #tpu.dot_dimension_numbers<[1], [1], [0], [0], [0, 0, 1, 0], [], []>} : vector<8x4xf32>, vector<512x4xf32>, vector<8x512xf32> -> vector<8x512xf32>
    %48 = arith.addf %42, %47 : vector<8x512xf32>
    %c0_56 = arith.constant 0 : index
    %c2_57 = arith.constant 2 : index
    %c2_58 = arith.constant 2 : index
    %c0_59 = arith.constant 0 : index
    %49 = vector.load %arg1[%c0_56, %c2_57, %c2_58, %c0_59] : memref<2x18x18x4xf32, #tpu.memory_space<vmem>>, vector<2x16x16x4xf32>
    %50 = vector.shape_cast %49 : vector<2x16x16x4xf32> to vector<512x4xf32>
    %c8 = arith.constant 8 : index
    %c0_60 = arith.constant 0 : index
    %c0_61 = arith.constant 0 : index
    %51 = vector.load %arg2[%c8, %c0_60, %c0_61] : memref<9x8x4xf32, #tpu.memory_space<vmem>>, vector<1x8x4xf32>
    %52 = vector.shape_cast %51 : vector<1x8x4xf32> to vector<8x4xf32>
    %cst_62 = arith.constant dense<0.000000e+00> : vector<8x512xf32>
    %53 = tpu.matmul %52, %50, %cst_62 {dimension_numbers = #tpu.dot_dimension_numbers<[1], [1], [0], [0], [0, 0, 1, 0], [], []>} : vector<8x4xf32>, vector<512x4xf32>, vector<8x512xf32> -> vector<8x512xf32>
    %54 = arith.addf %48, %53 : vector<8x512xf32>
    %c0_63 = arith.constant 0 : index
    %c0_64 = arith.constant 0 : index
    %55 = vector.load %arg3[%c0_63, %c0_64] : memref<8x1xf32, #tpu.memory_space<vmem>>, vector<8x1xf32>
    %56 = vector.broadcast %55 : vector<8x1xf32> to vector<8x512xf32>
    %57 = arith.addf %54, %56 : vector<8x512xf32>
    %cst_65 = arith.constant 0.000000e+00 : f32
    %58 = vector.broadcast %cst_65 : f32 to vector<8x512xf32>
    %59 = arith.maximumf %57, %58 : vector<8x512xf32>
    %60 = vector.extract_strided_slice %59 {offsets = [0, 0], sizes = [1, 256], strides = [1, 1]} : vector<8x512xf32> to vector<1x256xf32>
    %61 = vector.extract_strided_slice %59 {offsets = [1, 0], sizes = [1, 256], strides = [1, 1]} : vector<8x512xf32> to vector<1x256xf32>
    %62 = vector.extract_strided_slice %59 {offsets = [2, 0], sizes = [1, 256], strides = [1, 1]} : vector<8x512xf32> to vector<1x256xf32>
    %63 = vector.extract_strided_slice %59 {offsets = [3, 0], sizes = [1, 256], strides = [1, 1]} : vector<8x512xf32> to vector<1x256xf32>
    %64 = vector.extract_strided_slice %59 {offsets = [4, 0], sizes = [1, 256], strides = [1, 1]} : vector<8x512xf32> to vector<1x256xf32>
    %65 = vector.extract_strided_slice %59 {offsets = [5, 0], sizes = [1, 256], strides = [1, 1]} : vector<8x512xf32> to vector<1x256xf32>
    %66 = vector.extract_strided_slice %59 {offsets = [6, 0], sizes = [1, 256], strides = [1, 1]} : vector<8x512xf32> to vector<1x256xf32>
    %67 = vector.extract_strided_slice %59 {offsets = [7, 0], sizes = [1, 256], strides = [1, 1]} : vector<8x512xf32> to vector<1x256xf32>
    %68 = tpu.concatenate %60, %61, %62, %63, %64, %65, %66, %67 in 1 : vector<1x256xf32>, vector<1x256xf32>, vector<1x256xf32>, vector<1x256xf32>, vector<1x256xf32>, vector<1x256xf32>, vector<1x256xf32>, vector<1x256xf32> -> vector<1x2048xf32>
    %69 = vector.extract_strided_slice %59 {offsets = [0, 256], sizes = [1, 256], strides = [1, 1]} : vector<8x512xf32> to vector<1x256xf32>
    %70 = vector.extract_strided_slice %59 {offsets = [1, 256], sizes = [1, 256], strides = [1, 1]} : vector<8x512xf32> to vector<1x256xf32>
    %71 = vector.extract_strided_slice %59 {offsets = [2, 256], sizes = [1, 256], strides = [1, 1]} : vector<8x512xf32> to vector<1x256xf32>
    %72 = vector.extract_strided_slice %59 {offsets = [3, 256], sizes = [1, 256], strides = [1, 1]} : vector<8x512xf32> to vector<1x256xf32>
    %73 = vector.extract_strided_slice %59 {offsets = [4, 256], sizes = [1, 256], strides = [1, 1]} : vector<8x512xf32> to vector<1x256xf32>
    %74 = vector.extract_strided_slice %59 {offsets = [5, 256], sizes = [1, 256], strides = [1, 1]} : vector<8x512xf32> to vector<1x256xf32>
    %75 = vector.extract_strided_slice %59 {offsets = [6, 256], sizes = [1, 256], strides = [1, 1]} : vector<8x512xf32> to vector<1x256xf32>
    %76 = vector.extract_strided_slice %59 {offsets = [7, 256], sizes = [1, 256], strides = [1, 1]} : vector<8x512xf32> to vector<1x256xf32>
    %77 = tpu.concatenate %69, %70, %71, %72, %73, %74, %75, %76 in 1 : vector<1x256xf32>, vector<1x256xf32>, vector<1x256xf32>, vector<1x256xf32>, vector<1x256xf32>, vector<1x256xf32>, vector<1x256xf32>, vector<1x256xf32> -> vector<1x2048xf32>
    %78 = tpu.concatenate %68, %77 in 0 : vector<1x2048xf32>, vector<1x2048xf32> -> vector<2x2048xf32>
    %c0_66 = arith.constant 0 : index
    %c0_67 = arith.constant 0 : index
    %79 = vector.load %arg4[%c0_66, %c0_67] : memref<6x2048xf32, #tpu.memory_space<vmem>>, vector<6x2048xf32>
    %cst_68 = arith.constant dense<0.000000e+00> : vector<2x6xf32>
    %80 = tpu.matmul %78, %79, %cst_68 {dimension_numbers = #tpu.dot_dimension_numbers<[1], [1], [0], [0], [0, 0, 1, 0], [], []>} : vector<2x2048xf32>, vector<6x2048xf32>, vector<2x6xf32> -> vector<2x6xf32>
    %c0_69 = arith.constant 0 : index
    %c0_70 = arith.constant 0 : index
    %81 = vector.load %arg5[%c0_69, %c0_70] : memref<1x6xf32, #tpu.memory_space<vmem>>, vector<1x6xf32>
    %82 = vector.broadcast %81 : vector<1x6xf32> to vector<2x6xf32>
    %83 = arith.addf %80, %82 : vector<2x6xf32>
    %c0_71 = arith.constant 0 : index
    %c0_72 = arith.constant 0 : index
    %84 = vector.load %arg6[%c0_71, %c0_72] : memref<2x6xf32, #tpu.memory_space<vmem>>, vector<2x6xf32>
    tpu.vector_store %arg6[%c0_71, %c0_72], %83 {strides = array<i32>} : memref<2x6xf32, #tpu.memory_space<vmem>>, vector<2x6xf32>,
    return
  }
  func.func @transform_0(%arg0: i32) -> (i32, i32, i32, i32) {
    %c0_i32 = arith.constant 0 : i32
    %c0_i32_0 = arith.constant 0 : i32
    %c0_i32_1 = arith.constant 0 : i32
    %c0_i32_2 = arith.constant 0 : i32
    %c0_i32_3 = arith.constant 0 : i32
    return %c0_i32, %c0_i32_0, %c0_i32_1, %c0_i32_2 : i32, i32, i32, i32
  }
  func.func @transform_1(%arg0: i32) -> (i32, i32, i32) {
    %c0_i32 = arith.constant 0 : i32
    %c0_i32_0 = arith.constant 0 : i32
    %c0_i32_1 = arith.constant 0 : i32
    %c0_i32_2 = arith.constant 0 : i32
    return %c0_i32, %c0_i32_0, %c0_i32_1 : i32, i32, i32
  }
  func.func @transform_2(%arg0: i32) -> (i32, i32) {
    %c0_i32 = arith.constant 0 : i32
    %c0_i32_0 = arith.constant 0 : i32
    %c0_i32_1 = arith.constant 0 : i32
    return %c0_i32, %c0_i32_0 : i32, i32
  }
  func.func @transform_3(%arg0: i32) -> (i32, i32) {
    %c0_i32 = arith.constant 0 : i32
    %c0_i32_0 = arith.constant 0 : i32
    %c0_i32_1 = arith.constant 0 : i32
    return %c0_i32, %c0_i32_0 : i32, i32
  }
  func.func @transform_4(%arg0: i32) -> (i32, i32) {
    %c0_i32 = arith.constant 0 : i32
    %c0_i32_0 = arith.constant 0 : i32
    %c0_i32_1 = arith.constant 0 : i32
    return %c0_i32, %c0_i32_0 : i32, i32
  }
  func.func @transform_5(%arg0: i32) -> (i32, i32) {
    %c0_i32 = arith.constant 0 : i32
    %c0_i32_0 = arith.constant 0 : i32
    %c0_i32_1 = arith.constant 0 : i32
    return %c0_i32, %c0_i32_0 : i32, i32
  }
}

</mosaic_0001>

<bundles_post_ra>
// kernel: tpu_custom_call.1
= control target key start
LH: loop header
LB: loop body
LE: loop exit
PB: predicated region body
PF: predicated region fallthrough
CT: control target
= control target key end

     0   :  { %vm152_vm0 = vcmask 31744   ;;  %s9302_s0 = inlined_call_operand.vmem [shape: f32[2,18,18,4], index: 0, kind: input, shape index: {}]   ;;  %s9303_s1 = inlined_call_operand.vmem [shape: f32[9,8,4], index: 1, kind: input, shape index: {}]   ;;  %s9304_s2 = inlined_call_operand.vmem [shape: f32[8,1], index: 2, kind: input, shape index: {}]   ;;  %s9305_s3 = inlined_call_operand.vmem [shape: f32[6,2048], index: 3, kind: input, shape index: {}]   ;;  %s9306_s4 = inlined_call_operand.vmem [shape: f32[1,6], index: 4, kind: input, shape index: {}]   ;;  %s9307_s5 = inlined_call_operand.hbm [shape: f32[2,6], index: 5, kind: output, shape index: {}]  }
   0x1   :  { %v102_v0 = vld [vmem:[%s9302_s0 + $0xc1] sm:$0xff]  ;;  %v103_v1 = vld [vmem:[%s9302_s0 + $0xc9] sm:$0xff]  ;;  %v134_v2 = vld [vmem:[%s9302_s0 + $0x271] sm:$0xff] }
   0x2   :  { %v5995_v3 = vpack.c.bf16 %v103_v1, %v102_v0  ;;  %vm6975_vm1 = vmpackc.low %vm152_vm0, %vm152_vm0  ;;  %v135_v5 = vld [vmem:[%s9302_s0 + $0x279] sm:$0xff]  ;;  %v86_v6 = vld [vmem:[%s9302_s0 + $0x1] sm:$0xff] }
   0x3   :  { %v6043_v7 = vpack.c.bf16 %v135_v5, %v134_v2  ;;  %v87_v8 = vld [vmem:[%s9302_s0 + $0x9] sm:$0xff]  ;;  %v118_v9 = vld [vmem:[%s9302_s0 + $0x1b1] sm:$0xff]  ;;  %v119_v10 = vld [vmem:[%s9302_s0 + $0x1b9] sm:$0xff] }
   0x4   :  { %5997 = vmatprep.subr.msk.bf16.mxu0 %vm6975_vm1, %v5995_v3  ;;  %v5998_v11 = vpack.c.bf16 %v87_v8, %v86_v6  ;;  %v6046_v12 = vpack.c.bf16 %v119_v10, %v118_v9  ;;  %v104_v13 = vld [vmem:[%s9302_s0 + $0xd9] sm:$0xff]  ;;  %v105_v14 = vld [vmem:[%s9302_s0 + $0xe1] sm:$0xff]  ;;  %v136_v15 = vld [vmem:[%s9302_s0 + $0x289] sm:$0xff] }
   0x5   :  { %6045 = vmatprep.subr.msk.bf16.mxu1 %vm6975_vm1, %v6043_v7  ;;  %v6001_v16 = vpack.c.bf16 %v105_v14, %v104_v13  ;;  %v137_v17 = vld [vmem:[%s9302_s0 + $0x291] sm:$0xff]  ;;  %v88_v19 = vld [vmem:[%s9302_s0 + $0x19] sm:$0xff]  ;;  %v89_v20 = vld [vmem:[%s9302_s0 + $0x21] sm:$0xff] }
   0x6   :  { %6000 = vmatpush3.bf16.xpose.msk.msra.mxu0 %vm6975_vm1, %v5998_v11  ;;  %6048 = vmatpush3.bf16.xpose.msk.msra.mxu1 %vm6975_vm1, %v6046_v12  ;;  %v6049_v18 = vpack.c.bf16 %v137_v17, %v136_v15  ;;  %v120_v21 = vld [vmem:[%s9302_s0 + $0x1c9] sm:$0xff]  ;;  %v121_v22 = vld [vmem:[%s9302_s0 + $0x1d1] sm:$0xff]  ;;  %v107_v24 = vld [vmem:[%s9302_s0 + $0xf9] sm:$0xff]  ;;  %v6004_v27 = vpack.c.bf16 %v89_v20, %v88_v19 }
   0x7   :  { %6003 = vmatprep.subr.msk.bf16.mxu0 %vm6975_vm1, %v6001_v16  ;;  %v106_v23 = vld [vmem:[%s9302_s0 + $0xf1] sm:$0xff]  ;;  %v138_v25 = vld [vmem:[%s9302_s0 + $0x2a1] sm:$0xff]  ;;  %v139_v26 = vld [vmem:[%s9302_s0 + $0x2a9] sm:$0xff]  ;;  %v6052_v28 = vpack.c.bf16 %v121_v22, %v120_v21 }
   0x8   :  { %6051 = vmatprep.subr.msk.bf16.mxu1 %vm6975_vm1, %v6049_v18  ;;  %v6007_v29 = vpack.c.bf16 %v107_v24, %v106_v23  ;;  %v6055_v30 = vpack.c.bf16 %v139_v26, %v138_v25  ;;  %v90_v31 = vld [vmem:[%s9302_s0 + $0x31] sm:$0xff]  ;;  %v91_v32 = vld [vmem:[%s9302_s0 + $0x39] sm:$0xff]  ;;  %v122_v33 = vld [vmem:[%s9302_s0 + $0x1e1] sm:$0xff] }
   0x9   :  { %v123_v34 = vld [vmem:[%s9302_s0 + $0x1e9] sm:$0xff]  ;;  %v109_v36 = vld [vmem:[%s9302_s0 + $0x111] sm:$0xff]  ;;  %v140_v37 = vld [vmem:[%s9302_s0 + $0x2b9] sm:$0xff]  ;;  %v6010_v39 = vpack.c.bf16 %v91_v32, %v90_v31 }
   0xa   :  { %v108_v35 = vld [vmem:[%s9302_s0 + $0x109] sm:$0xff]  ;;  %v141_v38 = vld [vmem:[%s9302_s0 + $0x2c1] sm:$0xff]  ;;  %v6058_v40 = vpack.c.bf16 %v123_v34, %v122_v33  ;;  %v93_v44 = vld [vmem:[%s9302_s0 + $0x51] sm:$0xff] }
   0xb   :  { %v6013_v41 = vpack.c.bf16 %v109_v36, %v108_v35  ;;  %v6061_v42 = vpack.c.bf16 %v141_v38, %v140_v37  ;;  %v92_v43 = vld [vmem:[%s9302_s0 + $0x49] sm:$0xff]  ;;  %v124_v46 = vld [vmem:[%s9302_s0 + $0x1f9] sm:$0xff]  ;;  %v125_v47 = vld [vmem:[%s9302_s0 + $0x201] sm:$0xff] }
   0xc   :  { %v7087_v45 = vld [vmem:[%s9303_s1 + $0x8] sm:$0xff]  ;;  %v142_v50 = vld [vmem:[%s9302_s0 + $0x2d1] sm:$0xff]  ;;  %v143_v51 = vld [vmem:[%s9302_s0 + $0x2d9] sm:$0xff]  ;;  %v6016_v52 = vpack.c.bf16 %v93_v44, %v92_v43  ;;  %v6064_v53 = vpack.c.bf16 %v125_v47, %v124_v46 }
   0xd   :  { %v110_v48 = vld [vmem:[%s9302_s0 + $0x121] sm:$0xff]  ;;  %v111_v49 = vld [vmem:[%s9302_s0 + $0x129] sm:$0xff]  ;;  %5415 = vmatprep.mubr.msk.f32.mxu0 %vm152_vm0, %v7087_v45  ;;  %5449 = vmatprep.mubr.msk.f32.mxu1 %vm152_vm0, %v7087_v45  ;;  %v6067_v55 = vpack.c.bf16 %v143_v51, %v142_v50  ;;  %v126_v58 = vld [vmem:[%s9302_s0 + $0x211] sm:$0xff] }
   0xe   :  { %6006 = vmatpush3.bf16.xpose.msk.msra.mxu0 %vm6975_vm1, %v6004_v27  ;;  %6054 = vmatpush3.bf16.xpose.msk.msra.mxu1 %vm6975_vm1, %v6052_v28  ;;  %v6019_v54 = vpack.c.bf16 %v111_v49, %v110_v48  ;;  %v94_v56 = vld [vmem:[%s9302_s0 + $0x61] sm:$0xff]  ;;  %v95_v57 = vld [vmem:[%s9302_s0 + $0x69] sm:$0xff]  ;;  %v127_v59 = vld [vmem:[%s9302_s0 + $0x219] sm:$0xff] }
   0xf   :  { %6009 = vmatprep.subr.msk.bf16.mxu0 %vm6975_vm1, %v6007_v29  ;;  %6057 = vmatprep.subr.msk.bf16.mxu1 %vm6975_vm1, %v6055_v30  ;;  %v112_v60 = vld [vmem:[%s9302_s0 + $0x139] sm:$0xff]  ;;  %v113_v61 = vld [vmem:[%s9302_s0 + $0x141] sm:$0xff]  ;;  %v144_v62 = vld [vmem:[%s9302_s0 + $0x2e9] sm:$0xff]  ;;  %v6022_v0 = vpack.c.bf16 %v95_v57, %v94_v56  ;;  %v6070_v1 = vpack.c.bf16 %v127_v59, %v126_v58 }
  0x10   :  { %v145_v63 = vld [vmem:[%s9302_s0 + $0x2f1] sm:$0xff]  ;;  %v6025_v2 = vpack.c.bf16 %v113_v61, %v112_v60  ;;  %v96_v5 = vld [vmem:[%s9302_s0 + $0x79] sm:$0xff]  ;;  %v97_v6 = vld [vmem:[%s9302_s0 + $0x81] sm:$0xff] }
  0x11   :  { %v6073_v3 = vpack.c.bf16 %v145_v63, %v144_v62  ;;  %v128_v7 = vld [vmem:[%s9302_s0 + $0x229] sm:$0xff]  ;;  %v129_v8 = vld [vmem:[%s9302_s0 + $0x231] sm:$0xff]  ;;  %v115_v10 = vld [vmem:[%s9302_s0 + $0x159] sm:$0xff]  ;;  %v6028_v13 = vpack.c.bf16 %v97_v6, %v96_v5 }
  0x12   :  { %v114_v9 = vld [vmem:[%s9302_s0 + $0x151] sm:$0xff]  ;;  %v146_v11 = vld [vmem:[%s9302_s0 + $0x301] sm:$0xff]  ;;  %v147_v12 = vld [vmem:[%s9302_s0 + $0x309] sm:$0xff]  ;;  %v6076_v14 = vpack.c.bf16 %v129_v8, %v128_v7 }
  0x13   :  { %v6031_v15 = vpack.c.bf16 %v115_v10, %v114_v9  ;;  %v6079_v16 = vpack.c.bf16 %v147_v12, %v146_v11  ;;  %v98_v17 = vld [vmem:[%s9302_s0 + $0x91] sm:$0xff]  ;;  %v99_v18 = vld [vmem:[%s9302_s0 + $0x99] sm:$0xff]  ;;  %v130_v19 = vld [vmem:[%s9302_s0 + $0x241] sm:$0xff] }
  0x14   :  { %v131_v20 = vld [vmem:[%s9302_s0 + $0x249] sm:$0xff]  ;;  %v117_v22 = vld [vmem:[%s9302_s0 + $0x171] sm:$0xff]  ;;  %v148_v23 = vld [vmem:[%s9302_s0 + $0x319] sm:$0xff]  ;;  %v6034_v25 = vpack.c.bf16 %v99_v18, %v98_v17 }
  0x15   :  { %v116_v21 = vld [vmem:[%s9302_s0 + $0x169] sm:$0xff]  ;;  %v149_v24 = vld [vmem:[%s9302_s0 + $0x321] sm:$0xff]  ;;  %v6082_v26 = vpack.c.bf16 %v131_v20, %v130_v19  ;;  %v101_v30 = vld [vmem:[%s9302_s0 + $0xb1] sm:$0xff] }
  0x16   :  { %6012 = vmatpush3.bf16.xpose.msk.msra.mxu0 %vm6975_vm1, %v6010_v39  ;;  %6060 = vmatpush3.bf16.xpose.msk.msra.mxu1 %vm6975_vm1, %v6058_v40  ;;  %v6037_v27 = vpack.c.bf16 %v117_v22, %v116_v21  ;;  %v6085_v28 = vpack.c.bf16 %v149_v24, %v148_v23  ;;  %v100_v29 = vld [vmem:[%s9302_s0 + $0xa9] sm:$0xff]  ;;  %v132_v31 = vld [vmem:[%s9302_s0 + $0x259] sm:$0xff]  ;;  %v133_v32 = vld [vmem:[%s9302_s0 + $0x261] sm:$0xff] }
  0x17   :  { %6015 = vmatprep.subr.msk.bf16.mxu0 %vm6975_vm1, %v6013_v41  ;;  %6063 = vmatprep.subr.msk.bf16.mxu1 %vm6975_vm1, %v6061_v42  ;;  %v37_v33 = vld [vmem:[%s9302_s0 + $0xc0] sm:$0xff]  ;;  %v38_v34 = vld [vmem:[%s9302_s0 + $0xc8] sm:$0xff]  ;;  %v69_v35 = vld [vmem:[%s9302_s0 + $0x270] sm:$0xff]  ;;  %v6040_v37 = vpack.c.bf16 %v101_v30, %v100_v29  ;;  %v6088_v38 = vpack.c.bf16 %v133_v32, %v132_v31 }
  0x18   :  { %v70_v36 = vld [vmem:[%s9302_s0 + $0x278] sm:$0xff]  ;;  %v7243_v39 = vpack.c.bf16 %v38_v34, %v37_v33  ;;  %v21_v41 = vld [vmem:[%s9302_s0] sm:$0xff]  ;;  %v22_v42 = vld [vmem:[%s9302_s0 + $0x8] sm:$0xff] }
  0x19   :  { %v7245_v40 = vpack.c.bf16 %v70_v36, %v69_v35  ;;  %v53_v43 = vld [vmem:[%s9302_s0 + $0x1b0] sm:$0xff]  ;;  %v54_v44 = vld [vmem:[%s9302_s0 + $0x1b8] sm:$0xff]  ;;  %v40_v47 = vld [vmem:[%s9302_s0 + $0xe0] sm:$0xff]  ;;  %v6094_v50 = vpack.c.bf16 %v22_v42, %v21_v41 }
  0x1a   :  { %v39_v46 = vld [vmem:[%s9302_s0 + $0xd8] sm:$0xff]  ;;  %v71_v48 = vld [vmem:[%s9302_s0 + $0x288] sm:$0xff]  ;;  %v72_v49 = vld [vmem:[%s9302_s0 + $0x290] sm:$0xff]  ;;  %v6142_v51 = vpack.c.bf16 %v54_v44, %v53_v43 }
  0x1e   :  { %6018 = vmatpush3.bf16.xpose.msk.msra.mxu0 %vm6975_vm1, %v6016_v52  ;;  %6066 = vmatpush3.bf16.xpose.msk.msra.mxu1 %vm6975_vm1, %v6064_v53 }
  0x1f   :  { %6021 = vmatprep.subr.msk.bf16.mxu0 %vm6975_vm1, %v6019_v54  ;;  %6069 = vmatprep.subr.msk.bf16.mxu1 %vm6975_vm1, %v6067_v55 }
  0x26   :  { %6024 = vmatpush3.bf16.xpose.msk.msra.mxu0 %vm6975_vm1, %v6022_v0  ;;  %6072 = vmatpush3.bf16.xpose.msk.msra.mxu1 %vm6975_vm1, %v6070_v1 }
  0x27   :  { %6027 = vmatprep.subr.msk.bf16.mxu0 %vm6975_vm1, %v6025_v2  ;;  %6075 = vmatprep.subr.msk.bf16.mxu1 %vm6975_vm1, %v6073_v3 }
  0x2e   :  { %6030 = vmatpush3.bf16.xpose.msk.msra.mxu0 %vm6975_vm1, %v6028_v13  ;;  %6078 = vmatpush3.bf16.xpose.msk.msra.mxu1 %vm6975_vm1, %v6076_v14 }
  0x2f   :  { %6033 = vmatprep.subr.msk.bf16.mxu0 %vm6975_vm1, %v6031_v15  ;;  %6081 = vmatprep.subr.msk.bf16.mxu1 %vm6975_vm1, %v6079_v16 }
  0x36   :  { %6036 = vmatpush3.bf16.xpose.msk.msra.mxu0 %vm6975_vm1, %v6034_v25  ;;  %6084 = vmatpush3.bf16.xpose.msk.msra.mxu1 %vm6975_vm1, %v6082_v26 }
  0x37   :  { %6039 = vmatprep.subr.msk.bf16.mxu0 %vm6975_vm1, %v6037_v27  ;;  %6087 = vmatprep.subr.msk.bf16.mxu1 %vm6975_vm1, %v6085_v28 }
  0x3e   :  { %6042 = vmatpush3.bf16.xpose.msk.msra.mxu0 %vm6975_vm1, %v6040_v37  ;;  %6090 = vmatpush3.bf16.xpose.msk.msra.mxu1 %vm6975_vm1, %v6088_v38 }
  0x3f   :  { %6093 = vmatprep.subr.msk.bf16.mxu0 %vm6975_vm1, %v7243_v39  ;;  %6141 = vmatprep.subr.msk.bf16.mxu1 %vm6975_vm1, %v7245_v40 }
  0x40   :  { %10 = vsyncpa [#allocation3], 0  ;;  %v7281_v52 = vpack.c.bf16 %v40_v47, %v39_v46  ;;  %v7283_v53 = vpack.c.bf16 %v72_v49, %v71_v48  ;;  %v7292_v54 = vld [vmem:[%s9303_s1] sm:$0xff]  ;;  %v23_v55 = vld [vmem:[%s9302_s0 + $0x18] sm:$0xff]  ;;  %vm3768_vm2 = vcmask 1040384   ;;  %s6933_s17 = smov [#allocation2]  }
  0x41   :  { %v24_v56 = vld [vmem:[%s9302_s0 + $0x20] sm:$0xff]  ;;  %v56_v57 = vld [vmem:[%s9302_s0 + $0x1d0] sm:$0xff]  ;;  %v42_v59 = vld [vmem:[%s9302_s0 + $0xf8] sm:$0xff]  ;;  %s4376_s18 = sshll.u32 %s6933_s17, 4  ;;  %vm4368_vm3 = vcmask 41984   ;;  %s4377_s18 = int_to_ptr.vmem [resolvable:$true] %s4376_s18 }
  0x42   :  { %v41_v58 = vld [vmem:[%s9302_s0 + $0xf0] sm:$0xff]  ;;  %v73_v60 = vld [vmem:[%s9302_s0 + $0x2a0] sm:$0xff]  ;;  %v74_v61 = vld [vmem:[%s9302_s0 + $0x2a8] sm:$0xff]  ;;  %v7332_v62 = vpack.c.bf16 %v24_v56, %v23_v55  ;;  %p6913_p1 = scmp.lt.s32.totalorder %s4377_s18, %s4377_s18 }
  0x43   :  { %v7336_v0 = vpack.c.bf16 %v42_v59, %v41_v58  ;;  %v7338_v1 = vpack.c.bf16 %v74_v61, %v73_v60  ;;  %v25_v2 = vld [vmem:[%s9302_s0 + $0x30] sm:$0xff]  ;;  %v26_v3 = vld [vmem:[%s9302_s0 + $0x38] sm:$0xff]  ;;  %v57_v5 = vld [vmem:[%s9302_s0 + $0x1e0] sm:$0xff] }
  0x44   :  { %v58_v6 = vld [vmem:[%s9302_s0 + $0x1e8] sm:$0xff]  ;;  %v44_v8 = vld [vmem:[%s9302_s0 + $0x110] sm:$0xff]  ;;  %v75_v9 = vld [vmem:[%s9302_s0 + $0x2b8] sm:$0xff]  ;;  %v7376_v11 = vpack.c.bf16 %v26_v3, %v25_v2 }
  0x45   :  { %5416 = vmatmul.mubr.msk.f32.vlgmr.msra.gmra.mrb[0].mxu0 %vm152_vm0, %v7087_v45  ;;  %5450 = vmatmul.mubr.msk.f32.vlgmr.msra.gmra.mrb[0].mxu1 %vm152_vm0, %v7087_v45  ;;  %v55_v45 = vld [vmem:[%s9302_s0 + $0x1c8] sm:$0xff]  ;;  %v76_v10 = vld [vmem:[%s9302_s0 + $0x2c0] sm:$0xff]  ;;  %v7378_v12 = vpack.c.bf16 %v58_v6, %v57_v5  ;;  %v28_v16 = vld [vmem:[%s9302_s0 + $0x50] sm:$0xff] }
  0x46   :  { %6096 = vmatpush3.bf16.xpose.msk.msra.mxu0 %vm6975_vm1, %v6094_v50  ;;  %6144 = vmatpush3.bf16.xpose.msk.msra.mxu1 %vm6975_vm1, %v6142_v51  ;;  %v7334_v63 = vpack.c.bf16 %v56_v57, %v55_v45  ;;  %v43_v7 = vld [vmem:[%s9302_s0 + $0x108] sm:$0xff]  ;;  %v7382_v14 = vpack.c.bf16 %v76_v10, %v75_v9  ;;  %v59_v17 = vld [vmem:[%s9302_s0 + $0x1f8] sm:$0xff]  ;;  %v60_v18 = vld [vmem:[%s9302_s0 + $0x200] sm:$0xff] }
  0x47   :  { %6099 = vmatprep.subr.msk.bf16.mxu0 %vm6975_vm1, %v7281_v52  ;;  %6147 = vmatprep.subr.msk.bf16.mxu1 %vm6975_vm1, %v7283_v53  ;;  %v7380_v13 = vpack.c.bf16 %v44_v8, %v43_v7  ;;  %v27_v15 = vld [vmem:[%s9302_s0 + $0x48] sm:$0xff]  ;;  %v45_v19 = vld [vmem:[%s9302_s0 + $0x120] sm:$0xff]  ;;  %v77_v21 = vld [vmem:[%s9302_s0 + $0x2d0] sm:$0xff]  ;;  %v7422_v24 = vpack.c.bf16 %v60_v18, %v59_v17 }
  0x48   :  { %5483 = vmatprep.mubr.msk.f32.mxu0 %vm152_vm0, %v7292_v54  ;;  %5517 = vmatprep.mubr.msk.f32.mxu1 %vm152_vm0, %v7292_v54  ;;  %v46_v20 = vld [vmem:[%s9302_s0 + $0x128] sm:$0xff]  ;;  %v78_v22 = vld [vmem:[%s9302_s0 + $0x2d8] sm:$0xff]  ;;  %v7420_v23 = vpack.c.bf16 %v28_v16, %v27_v15  ;;  %v29_v27 = vld [vmem:[%s9302_s0 + $0x60] sm:$0xff] }
  0x49   :  { %v7424_v25 = vpack.c.bf16 %v46_v20, %v45_v19  ;;  %v7426_v26 = vpack.c.bf16 %v78_v22, %v77_v21  ;;  %v30_v28 = vld [vmem:[%s9302_s0 + $0x68] sm:$0xff]  ;;  %v61_v29 = vld [vmem:[%s9302_s0 + $0x210] sm:$0xff]  ;;  %v62_v30 = vld [vmem:[%s9302_s0 + $0x218] sm:$0xff] }
  0x4a   :  { %v47_v31 = vld [vmem:[%s9302_s0 + $0x138] sm:$0xff]  ;;  %v48_v32 = vld [vmem:[%s9302_s0 + $0x140] sm:$0xff]  ;;  %v79_v33 = vld [vmem:[%s9302_s0 + $0x2e8] sm:$0xff]  ;;  %v7464_v35 = vpack.c.bf16 %v30_v28, %v29_v27  ;;  %v7466_v36 = vpack.c.bf16 %v62_v30, %v61_v29 }
  0x4b   :  { %v80_v34 = vld [vmem:[%s9302_s0 + $0x2f0] sm:$0xff]  ;;  %v7468_v37 = vpack.c.bf16 %v48_v32, %v47_v31  ;;  %v31_v41 = vld [vmem:[%s9302_s0 + $0x78] sm:$0xff]  ;;  %v32_v42 = vld [vmem:[%s9302_s0 + $0x80] sm:$0xff] }
  0x4c   :  { %v7470_v38 = vpack.c.bf16 %v80_v34, %v79_v33  ;;  %v63_v43 = vld [vmem:[%s9302_s0 + $0x228] sm:$0xff]  ;;  %v64_v44 = vld [vmem:[%s9302_s0 + $0x230] sm:$0xff]  ;;  %v50_v47 = vld [vmem:[%s9302_s0 + $0x158] sm:$0xff]  ;;  %v7508_v50 = vpack.c.bf16 %v32_v42, %v31_v41 }
  0x4d   :  { %v49_v46 = vld [vmem:[%s9302_s0 + $0x150] sm:$0xff]  ;;  %v81_v48 = vld [vmem:[%s9302_s0 + $0x300] sm:$0xff]  ;;  %v82_v49 = vld [vmem:[%s9302_s0 + $0x308] sm:$0xff]  ;;  %v7510_v51 = vpack.c.bf16 %v64_v44, %v63_v43 }
  0x4e   :  { %6102 = vmatpush3.bf16.xpose.msk.msra.mxu0 %vm6975_vm1, %v7332_v62  ;;  %6150 = vmatpush3.bf16.xpose.msk.msra.mxu1 %vm6975_vm1, %v7334_v63  ;;  %v7512_v55 = vpack.c.bf16 %v50_v47, %v49_v46  ;;  %v7514_v56 = vpack.c.bf16 %v82_v49, %v81_v48  ;;  %v33_v45 = vld [vmem:[%s9302_s0 + $0x90] sm:$0xff]  ;;  %v34_v57 = vld [vmem:[%s9302_s0 + $0x98] sm:$0xff]  ;;  %v65_v58 = vld [vmem:[%s9302_s0 + $0x240] sm:$0xff] }
  0x4f   :  { %6105 = vmatprep.subr.msk.bf16.mxu0 %vm6975_vm1, %v7336_v0  ;;  %6153 = vmatprep.subr.msk.bf16.mxu1 %vm6975_vm1, %v7338_v1  ;;  %v66_v59 = vld [vmem:[%s9302_s0 + $0x248] sm:$0xff]  ;;  %v52_v61 = vld [vmem:[%s9302_s0 + $0x170] sm:$0xff]  ;;  %v83_v2 = vld [vmem:[%s9302_s0 + $0x318] sm:$0xff]  ;;  %v7552_v5 = vpack.c.bf16 %v34_v57, %v33_v45 }
  0x50   :  { %v51_v60 = vld [vmem:[%s9302_s0 + $0x168] sm:$0xff]  ;;  %v84_v3 = vld [vmem:[%s9302_s0 + $0x320] sm:$0xff]  ;;  %v7554_v6 = vpack.c.bf16 %v66_v59, %v65_v58  ;;  %v36_v10 = vld [vmem:[%s9302_s0 + $0xb0] sm:$0xff] }
  0x51   :  { %v7556_v7 = vpack.c.bf16 %v52_v61, %v51_v60  ;;  %v7558_v8 = vpack.c.bf16 %v84_v3, %v83_v2  ;;  %v35_v9 = vld [vmem:[%s9302_s0 + $0xa8] sm:$0xff]  ;;  %v67_v15 = vld [vmem:[%s9302_s0 + $0x258] sm:$0xff]  ;;  %v68_v16 = vld [vmem:[%s9302_s0 + $0x260] sm:$0xff] }
  0x52   :  { %v843_v17 = vld [vmem:[%s9302_s0 + $0xc2] sm:$0xff]  ;;  %v844_v18 = vld [vmem:[%s9302_s0 + $0xca] sm:$0xff]  ;;  %v875_v19 = vld [vmem:[%s9302_s0 + $0x272] sm:$0xff]  ;;  %v7596_v21 = vpack.c.bf16 %v36_v10, %v35_v9  ;;  %v7598_v22 = vpack.c.bf16 %v68_v16, %v67_v15 }
  0x53   :  { %v876_v20 = vld [vmem:[%s9302_s0 + $0x27a] sm:$0xff]  ;;  %v6187_v27 = vpack.c.bf16 %v844_v18, %v843_v17  ;;  %v827_v29 = vld [vmem:[%s9302_s0 + $0x2] sm:$0xff]  ;;  %v828_v30 = vld [vmem:[%s9302_s0 + $0xa] sm:$0xff] }
  0x54   :  { %v6235_v28 = vpack.c.bf16 %v876_v20, %v875_v19  ;;  %v859_v31 = vld [vmem:[%s9302_s0 + $0x1b2] sm:$0xff]  ;;  %v860_v32 = vld [vmem:[%s9302_s0 + $0x1ba] sm:$0xff]  ;;  %v846_v34 = vld [vmem:[%s9302_s0 + $0xe2] sm:$0xff]  ;;  %v6190_v43 = vpack.c.bf16 %v828_v30, %v827_v29 }
  0x55   :  { %v845_v33 = vld [vmem:[%s9302_s0 + $0xda] sm:$0xff]  ;;  %v877_v41 = vld [vmem:[%s9302_s0 + $0x28a] sm:$0xff]  ;;  %v878_v42 = vld [vmem:[%s9302_s0 + $0x292] sm:$0xff]  ;;  %v6238_v44 = vpack.c.bf16 %v860_v32, %v859_v31 }
  0x56   :  { %6108 = vmatpush3.bf16.xpose.msk.msra.mxu0 %vm6975_vm1, %v7376_v11  ;;  %6156 = vmatpush3.bf16.xpose.msk.msra.mxu1 %vm6975_vm1, %v7378_v12  ;;  %v7634_v46 = vpack.c.bf16 %v846_v34, %v845_v33  ;;  %v7636_v47 = vpack.c.bf16 %v878_v42, %v877_v41  ;;  %v7645_v48 = vld [vmem:[%s9303_s1 + $0x10] sm:$0xff]  ;;  %v829_v49 = vld [vmem:[%s9302_s0 + $0x1a] sm:$0xff]  ;;  %v830_v45 = vld [vmem:[%s9302_s0 + $0x22] sm:$0xff] }
  0x57   :  { %6111 = vmatprep.subr.msk.bf16.mxu0 %vm6975_vm1, %v7380_v13  ;;  %6159 = vmatprep.subr.msk.bf16.mxu1 %vm6975_vm1, %v7382_v14  ;;  %v862_v57 = vld [vmem:[%s9302_s0 + $0x1d2] sm:$0xff]  ;;  %v848_v59 = vld [vmem:[%s9302_s0 + $0xfa] sm:$0xff]  ;;  %v879_v60 = vld [vmem:[%s9302_s0 + $0x2a2] sm:$0xff]  ;;  %v7685_v2 = vpack.c.bf16 %v830_v45, %v829_v49 }
  0x58   :  { %v847_v58 = vld [vmem:[%s9302_s0 + $0xf2] sm:$0xff]  ;;  %v880_v61 = vld [vmem:[%s9302_s0 + $0x2aa] sm:$0xff]  ;;  %v832_v16 = vld [vmem:[%s9302_s0 + $0x3a] sm:$0xff] }
  0x59   :  { %v7689_v9 = vpack.c.bf16 %v848_v59, %v847_v58  ;;  %v7691_v10 = vpack.c.bf16 %v880_v61, %v879_v60  ;;  %v831_v15 = vld [vmem:[%s9302_s0 + $0x32] sm:$0xff]  ;;  %v863_v17 = vld [vmem:[%s9302_s0 + $0x1e2] sm:$0xff]  ;;  %v864_v18 = vld [vmem:[%s9302_s0 + $0x1ea] sm:$0xff] }
  0x5a   :  { %v849_v19 = vld [vmem:[%s9302_s0 + $0x10a] sm:$0xff]  ;;  %v850_v20 = vld [vmem:[%s9302_s0 + $0x112] sm:$0xff]  ;;  %v7729_v29 = vpack.c.bf16 %v832_v16, %v831_v15  ;;  %v7731_v30 = vpack.c.bf16 %v864_v18, %v863_v17  ;;  %v865_v41 = vld [vmem:[%s9302_s0 + $0x1fa] sm:$0xff] }
  0x5b   :  { %v7733_v31 = vpack.c.bf16 %v850_v20, %v849_v19  ;;  %v833_v33 = vld [vmem:[%s9302_s0 + $0x4a] sm:$0xff]  ;;  %v834_v34 = vld [vmem:[%s9302_s0 + $0x52] sm:$0xff]  ;;  %v866_v42 = vld [vmem:[%s9302_s0 + $0x202] sm:$0xff] }
  0x5c   :  { %v883_v49 = vld [vmem:[%s9302_s0 + $0x2d2] sm:$0xff]  ;;  %v884_v45 = vld [vmem:[%s9302_s0 + $0x2da] sm:$0xff]  ;;  %v835_v60 = vld [vmem:[%s9302_s0 + $0x62] sm:$0xff] }
  0x5d   :  { %v7779_v59 = vpack.c.bf16 %v884_v45, %v883_v49  ;;  %v836_v61 = vld [vmem:[%s9302_s0 + $0x6a] sm:$0xff]  ;;  %v867_v15 = vld [vmem:[%s9302_s0 + $0x212] sm:$0xff]  ;;  %v868_v16 = vld [vmem:[%s9302_s0 + $0x21a] sm:$0xff] }
  0x5e   :  { %6114 = vmatpush3.bf16.xpose.msk.msra.mxu0 %vm6975_vm1, %v7420_v23  ;;  %6162 = vmatpush3.bf16.xpose.msk.msra.mxu1 %vm6975_vm1, %v7422_v24  ;;  %v853_v17 = vld [vmem:[%s9302_s0 + $0x13a] sm:$0xff]  ;;  %v854_v18 = vld [vmem:[%s9302_s0 + $0x142] sm:$0xff]  ;;  %v885_v19 = vld [vmem:[%s9302_s0 + $0x2ea] sm:$0xff] }
  0x5f   :  { %6117 = vmatprep.subr.msk.bf16.mxu0 %vm6975_vm1, %v7424_v25  ;;  %6165 = vmatprep.subr.msk.bf16.mxu1 %vm6975_vm1, %v7426_v26  ;;  %v886_v20 = vld [vmem:[%s9302_s0 + $0x2f2] sm:$0xff]  ;;  %v856_v45 = vld [vmem:[%s9302_s0 + $0x15a] sm:$0xff] }
  0x60   :  { %v855_v49 = vld [vmem:[%s9302_s0 + $0x152] sm:$0xff]  ;;  %v3793_v4 = vld [vmem:[%s9305_s3 + $0x40] sm:$0x3f] }
  0x66   :  { %6120 = vmatpush3.bf16.xpose.msk.msra.mxu0 %vm6975_vm1, %v7464_v35  ;;  %6168 = vmatpush3.bf16.xpose.msk.msra.mxu1 %vm6975_vm1, %v7466_v36 }
  0x67   :  { %6123 = vmatprep.subr.msk.bf16.mxu0 %vm6975_vm1, %v7468_v37  ;;  %6171 = vmatprep.subr.msk.bf16.mxu1 %vm6975_vm1, %v7470_v38 }
  0x6e   :  { %6126 = vmatpush3.bf16.xpose.msk.msra.mxu0 %vm6975_vm1, %v7508_v50  ;;  %6174 = vmatpush3.bf16.xpose.msk.msra.mxu1 %vm6975_vm1, %v7510_v51 }
  0x6f   :  { %6129 = vmatprep.subr.msk.bf16.mxu0 %vm6975_vm1, %v7512_v55  ;;  %6177 = vmatprep.subr.msk.bf16.mxu1 %vm6975_vm1, %v7514_v56 }
  0x76   :  { %6132 = vmatpush3.bf16.xpose.msk.msra.mxu0 %vm6975_vm1, %v7552_v5  ;;  %6180 = vmatpush3.bf16.xpose.msk.msra.mxu1 %vm6975_vm1, %v7554_v6 }
  0x77   :  { %6135 = vmatprep.subr.msk.bf16.mxu0 %vm6975_vm1, %v7556_v7  ;;  %6183 = vmatprep.subr.msk.bf16.mxu1 %vm6975_vm1, %v7558_v8 }
  0x7e   :  { %6138 = vmatpush3.bf16.xpose.msk.msra.mxu0 %vm6975_vm1, %v7596_v21  ;;  %6186 = vmatpush3.bf16.xpose.msk.msra.mxu1 %vm6975_vm1, %v7598_v22 }
  0x7f   :  { %6189 = vmatprep.subr.msk.bf16.mxu0 %vm6975_vm1, %v6187_v27  ;;  %6237 = vmatprep.subr.msk.bf16.mxu1 %vm6975_vm1, %v6235_v28  ;;  %v881_v27 = vld [vmem:[%s9302_s0 + $0x2ba] sm:$0xff]  ;;  %v882_v28 = vld [vmem:[%s9302_s0 + $0x2c2] sm:$0xff] }
  0x80   :  { %v7735_v32 = vpack.c.bf16 %v882_v28, %v881_v27  ;;  %v7817_v27 = vpack.c.bf16 %v836_v61, %v835_v60  ;;  %v7819_v28 = vpack.c.bf16 %v868_v16, %v867_v15  ;;  %v887_v60 = vld [vmem:[%s9302_s0 + $0x302] sm:$0xff]  ;;  %v888_v61 = vld [vmem:[%s9302_s0 + $0x30a] sm:$0xff] }
  0x85   :  { %5484 = vmatmul.mubr.msk.f32.vlgmr.msra.gmra.mrb[0].mxu0 %vm152_vm0, %v7292_v54  ;;  %5518 = vmatmul.mubr.msk.f32.vlgmr.msra.gmra.mrb[0].mxu1 %vm152_vm0, %v7292_v54  ;;  %v861_v54 = vld [vmem:[%s9302_s0 + $0x1ca] sm:$0xff] }
  0x86   :  { %6192 = vmatpush3.bf16.xpose.msk.msra.mxu0 %vm6975_vm1, %v6190_v43  ;;  %6240 = vmatpush3.bf16.xpose.msk.msra.mxu1 %vm6975_vm1, %v6238_v44  ;;  %v7687_v3 = vpack.c.bf16 %v862_v57, %v861_v54  ;;  %v851_v43 = vld [vmem:[%s9302_s0 + $0x122] sm:$0xff]  ;;  %v852_v44 = vld [vmem:[%s9302_s0 + $0x12a] sm:$0xff]  ;;  %v7773_v54 = vpack.c.bf16 %v834_v34, %v833_v33  ;;  %v7775_v57 = vpack.c.bf16 %v866_v42, %v865_v41  ;;  %v837_v41 = vld [vmem:[%s9302_s0 + $0x7a] sm:$0xff] }
  0x87   :  { %6195 = vmatprep.subr.msk.bf16.mxu0 %vm6975_vm1, %v7634_v46  ;;  %6243 = vmatprep.subr.msk.bf16.mxu1 %vm6975_vm1, %v7636_v47  ;;  %v7777_v58 = vpack.c.bf16 %v852_v44, %v851_v43  ;;  %v7821_v33 = vpack.c.bf16 %v854_v18, %v853_v17  ;;  %v7823_v34 = vpack.c.bf16 %v886_v20, %v885_v19  ;;  %v838_v42 = vld [vmem:[%s9302_s0 + $0x82] sm:$0xff]  ;;  %v869_v43 = vld [vmem:[%s9302_s0 + $0x22a] sm:$0xff]  ;;  %v870_v44 = vld [vmem:[%s9302_s0 + $0x232] sm:$0xff] }
  0x88   :  { %5551 = vmatprep.mubr.msk.f32.mxu0 %vm152_vm0, %v7645_v48  ;;  %5585 = vmatprep.mubr.msk.f32.mxu1 %vm152_vm0, %v7645_v48  ;;  %v7861_v15 = vpack.c.bf16 %v838_v42, %v837_v41  ;;  %v7863_v16 = vpack.c.bf16 %v870_v44, %v869_v43  ;;  %v7865_v17 = vpack.c.bf16 %v856_v45, %v855_v49  ;;  %v839_v19 = vld [vmem:[%s9302_s0 + $0x92] sm:$0xff]  ;;  %v840_v20 = vld [vmem:[%s9302_s0 + $0x9a] sm:$0xff]  ;;  %v871_v41 = vld [vmem:[%s9302_s0 + $0x242] sm:$0xff] }
  0x89   :  { %v7867_v18 = vpack.c.bf16 %v888_v61, %v887_v60  ;;  %v872_v42 = vld [vmem:[%s9302_s0 + $0x24a] sm:$0xff]  ;;  %v858_v44 = vld [vmem:[%s9302_s0 + $0x172] sm:$0xff]  ;;  %v889_v49 = vld [vmem:[%s9302_s0 + $0x31a] sm:$0xff]  ;;  %v7905_v60 = vpack.c.bf16 %v840_v20, %v839_v19 }
  0x8a   :  { %9313 = vst [vmem:[#allocation5_spill] sm:$0xff] %v7863_v16  ;;  %9314 = vst [vmem:[#allocation6_spill] sm:$0xff] %v7865_v17  ;;  %v857_v43 = vld [vmem:[%s9302_s0 + $0x16a] sm:$0xff]  ;;  %v890_v45 = vld [vmem:[%s9302_s0 + $0x322] sm:$0xff]  ;;  %v7907_v61 = vpack.c.bf16 %v872_v42, %v871_v41 }
  0x8b   :  { %9315 = vst [vmem:[#allocation7_spill] sm:$0xff] %v7867_v18  ;;  %v842_v19 = vld [vmem:[%s9302_s0 + $0xb2] sm:$0xff]  ;;  %v873_v20 = vld [vmem:[%s9302_s0 + $0x25a] sm:$0xff]  ;;  %v874_v41 = vld [vmem:[%s9302_s0 + $0x262] sm:$0xff] }
  0x8e   :  { %6198 = vmatpush3.bf16.xpose.msk.msra.mxu0 %vm6975_vm1, %v7685_v2  ;;  %6246 = vmatpush3.bf16.xpose.msk.msra.mxu1 %vm6975_vm1, %v7687_v3 }
  0x8f   :  { %6201 = vmatprep.subr.msk.bf16.mxu0 %vm6975_vm1, %v7689_v9  ;;  %6249 = vmatprep.subr.msk.bf16.mxu1 %vm6975_vm1, %v7691_v10 }
  0x96   :  { %6204 = vmatpush3.bf16.xpose.msk.msra.mxu0 %vm6975_vm1, %v7729_v29  ;;  %6252 = vmatpush3.bf16.xpose.msk.msra.mxu1 %vm6975_vm1, %v7731_v30 }
  0x97   :  { %6207 = vmatprep.subr.msk.bf16.mxu0 %vm6975_vm1, %v7733_v31  ;;  %6255 = vmatprep.subr.msk.bf16.mxu1 %vm6975_vm1, %v7735_v32 }
  0x9e   :  { %6210 = vmatpush3.bf16.xpose.msk.msra.mxu0 %vm6975_vm1, %v7773_v54  ;;  %6258 = vmatpush3.bf16.xpose.msk.msra.mxu1 %vm6975_vm1, %v7775_v57 }
  0x9f   :  { %6213 = vmatprep.subr.msk.bf16.mxu0 %vm6975_vm1, %v7777_v58  ;;  %6261 = vmatprep.subr.msk.bf16.mxu1 %vm6975_vm1, %v7779_v59 }
  0xa6   :  { %6216 = vmatpush3.bf16.xpose.msk.msra.mxu0 %vm6975_vm1, %v7817_v27  ;;  %6264 = vmatpush3.bf16.xpose.msk.msra.mxu1 %vm6975_vm1, %v7819_v28 }
  0xa7   :  { %6219 = vmatprep.subr.msk.bf16.mxu0 %vm6975_vm1, %v7821_v33  ;;  %6267 = vmatprep.subr.msk.bf16.mxu1 %vm6975_vm1, %v7823_v34 }
  0xae   :  { %6222 = vmatpush3.bf16.xpose.msk.msra.mxu0 %vm6975_vm1, %v7861_v15  ;;  %6270 = vmatpush3.bf16.xpose.msk.msra.mxu1 %vm6975_vm1, %v7863_v16  ;;  %v841_v16 = vld [vmem:[%s9302_s0 + $0xaa] sm:$0xff] }
  0xaf   :  { %6225 = vmatprep.subr.msk.bf16.mxu0 %vm6975_vm1, %v7865_v17  ;;  %6273 = vmatprep.subr.msk.bf16.mxu1 %vm6975_vm1, %v7867_v18  ;;  %v7909_v18 = vpack.c.bf16 %v858_v44, %v857_v43  ;;  %v7911_v17 = vpack.c.bf16 %v890_v45, %v889_v49  ;;  %v7937_v42 = vpack.c.bf16 %v842_v19, %v841_v16  ;;  %v4648_v16 = vld [vmem:[%s9303_s1 + $0x18] sm:$0xff]  ;;  %v4768_v49 = vld [vmem:[%s9302_s0 + $0x2c1] sm:$0xff] }
  0xb0   :  { %v7939_v43 = vpack.c.bf16 %v874_v41, %v873_v20  ;;  %v4767_v44 = vld [vmem:[%s9302_s0 + $0x2b9] sm:$0xff] }
  0xb1   :  { %v8163_v41 = vpack.c.bf16 %v4768_v49, %v4767_v44  ;;  %v4756_v44 = vld [vmem:[%s9302_s0 + $0x231] sm:$0xff] }
  0xb2   :  { %v4741_v49 = vld [vmem:[%s9302_s0 + $0x151] sm:$0xff] }
  0xb6   :  { %6228 = vmatpush3.bf16.xpose.msk.msra.mxu0 %vm6975_vm1, %v7905_v60  ;;  %6276 = vmatpush3.bf16.xpose.msk.msra.mxu1 %vm6975_vm1, %v7907_v61 }
  0xb7   :  { %6231 = vmatprep.subr.msk.bf16.mxu0 %vm6975_vm1, %v7909_v18  ;;  %6279 = vmatprep.subr.msk.bf16.mxu1 %vm6975_vm1, %v7911_v17 }
  0xbe   :  { %6234 = vmatpush3.bf16.xpose.msk.msra.mxu0 %vm6975_vm1, %v7937_v42  ;;  %6282 = vmatpush3.bf16.xpose.msk.msra.mxu1 %vm6975_vm1, %v7939_v43 }
  0xbf   :  { %6285 = vmatprep.subr.msk.bf16.mxu0 %vm6975_vm1, %v7281_v52  ;;  %6333 = vmatprep.subr.msk.bf16.mxu1 %vm6975_vm1, %v7283_v53  ;;  %v4614_v52 = vld [vmem:[%s9302_s0 + $0x180] sm:$0xff]  ;;  %v4615_v53 = vld [vmem:[%s9302_s0 + $0x188] sm:$0xff] }
  0xc5   :  { %5552 = vmatmul.mubr.msk.f32.vlgmr.msra.gmra.mrb[0].mxu0 %vm152_vm0, %v7645_v48  ;;  %5586 = vmatmul.mubr.msk.f32.vlgmr.msra.gmra.mrb[0].mxu1 %vm152_vm0, %v7645_v48  ;;  %v4736_v48 = vld [vmem:[%s9302_s0 + $0x111] sm:$0xff] }
  0xc6   :  { %6288 = vmatpush3.bf16.xpose.msk.msra.mxu0 %vm6975_vm1, %v7332_v62  ;;  %6336 = vmatpush3.bf16.xpose.msk.msra.mxu1 %vm6975_vm1, %v7334_v63  ;;  %v4646_v62 = vld [vmem:[%s9302_s0 + $0x330] sm:$0xff]  ;;  %v4647_v63 = vld [vmem:[%s9302_s0 + $0x338] sm:$0xff] }
  0xc7   :  { %6291 = vmatprep.subr.msk.bf16.mxu0 %vm6975_vm1, %v7336_v0  ;;  %6339 = vmatprep.subr.msk.bf16.mxu1 %vm6975_vm1, %v7338_v1  ;;  %v8046_v0 = vpack.c.bf16 %v4615_v53, %v4614_v52  ;;  %v8048_v1 = vpack.c.bf16 %v4647_v63, %v4646_v62  ;;  %v4720_v52 = vld [vmem:[%s9302_s0 + $0x51] sm:$0xff]  ;;  %v4751_v53 = vld [vmem:[%s9302_s0 + $0x1f9] sm:$0xff]  ;;  %v4752_v62 = vld [vmem:[%s9302_s0 + $0x201] sm:$0xff] }
  0xc8   :  { %5619 = vmatprep.mubr.msk.f32.mxu0 %vm152_vm0, %v4648_v16  ;;  %5653 = vmatprep.mubr.msk.f32.mxu1 %vm152_vm0, %v4648_v16  ;;  %v4737_v63 = vld [vmem:[%s9302_s0 + $0x121] sm:$0xff] }
  0xce   :  { %6294 = vmatpush3.bf16.xpose.msk.msra.mxu0 %vm6975_vm1, %v7376_v11  ;;  %6342 = vmatpush3.bf16.xpose.msk.msra.mxu1 %vm6975_vm1, %v7378_v12  ;;  %v4731_v11 = vld [vmem:[%s9302_s0 + $0xd9] sm:$0xff]  ;;  %v4732_v12 = vld [vmem:[%s9302_s0 + $0xe1] sm:$0xff] }
  0xcf   :  { %6297 = vmatprep.subr.msk.bf16.mxu0 %vm6975_vm1, %v7380_v13  ;;  %6345 = vmatprep.subr.msk.bf16.mxu1 %vm6975_vm1, %v7382_v14  ;;  %v4763_v13 = vld [vmem:[%s9302_s0 + $0x289] sm:$0xff]  ;;  %v4764_v14 = vld [vmem:[%s9302_s0 + $0x291] sm:$0xff] }
  0xd6   :  { %6300 = vmatpush3.bf16.xpose.msk.msra.mxu0 %vm6975_vm1, %v7420_v23  ;;  %6348 = vmatpush3.bf16.xpose.msk.msra.mxu1 %vm6975_vm1, %v7422_v24  ;;  %v6379_v23 = vpack.c.bf16 %v4732_v12, %v4731_v11  ;;  %v6427_v24 = vpack.c.bf16 %v4764_v14, %v4763_v13  ;;  %v4738_v11 = vld [vmem:[%s9302_s0 + $0x129] sm:$0xff]  ;;  %v4769_v12 = vld [vmem:[%s9302_s0 + $0x2d1] sm:$0xff]  ;;  %v4770_v13 = vld [vmem:[%s9302_s0 + $0x2d9] sm:$0xff] }
  0xd7   :  { %6303 = vmatprep.subr.msk.bf16.mxu0 %vm6975_vm1, %v7424_v25  ;;  %6351 = vmatprep.subr.msk.bf16.mxu1 %vm6975_vm1, %v7426_v26  ;;  %v4715_v25 = vld [vmem:[%s9302_s0 + $0x19] sm:$0xff]  ;;  %v4716_v26 = vld [vmem:[%s9302_s0 + $0x21] sm:$0xff] }
  0xde   :  { %6306 = vmatpush3.bf16.xpose.msk.msra.mxu0 %vm6975_vm1, %v7464_v35  ;;  %6354 = vmatpush3.bf16.xpose.msk.msra.mxu1 %vm6975_vm1, %v7466_v36  ;;  %v4733_v35 = vld [vmem:[%s9302_s0 + $0xf1] sm:$0xff]  ;;  %v4734_v36 = vld [vmem:[%s9302_s0 + $0xf9] sm:$0xff] }
  0xdf   :  { %6309 = vmatprep.subr.msk.bf16.mxu0 %vm6975_vm1, %v7468_v37  ;;  %6357 = vmatprep.subr.msk.bf16.mxu1 %vm6975_vm1, %v7470_v38  ;;  %v4765_v37 = vld [vmem:[%s9302_s0 + $0x2a1] sm:$0xff]  ;;  %v4766_v38 = vld [vmem:[%s9302_s0 + $0x2a9] sm:$0xff] }
  0xe6   :  { %6312 = vmatpush3.bf16.xpose.msk.msra.mxu0 %vm6975_vm1, %v7508_v50  ;;  %6360 = vmatpush3.bf16.xpose.msk.msra.mxu1 %vm6975_vm1, %v7510_v51  ;;  %v6382_v50 = vpack.c.bf16 %v4716_v26, %v4715_v25  ;;  %v8207_v25 = vpack.c.bf16 %v4770_v13, %v4769_v12  ;;  %v4721_v26 = vld [vmem:[%s9302_s0 + $0x61] sm:$0xff]  ;;  %v4725_v13 = vld [vmem:[%s9302_s0 + $0x91] sm:$0xff] }
  0xe7   :  { %6315 = vmatprep.subr.msk.bf16.mxu0 %vm6975_vm1, %v7512_v55  ;;  %6363 = vmatprep.subr.msk.bf16.mxu1 %vm6975_vm1, %v7514_v56  ;;  %v8108_v55 = vpack.c.bf16 %v4734_v36, %v4733_v35  ;;  %v8110_v56 = vpack.c.bf16 %v4766_v38, %v4765_v37  ;;  %v4754_v35 = vld [vmem:[%s9302_s0 + $0x219] sm:$0xff]  ;;  %v4740_v37 = vld [vmem:[%s9302_s0 + $0x141] sm:$0xff]  ;;  %v4771_v38 = vld [vmem:[%s9302_s0 + $0x2e9] sm:$0xff] }
  0xe8   :  { %v4739_v36 = vld [vmem:[%s9302_s0 + $0x139] sm:$0xff] }
  0xee   :  { %6318 = vmatpush3.bf16.xpose.msk.msra.mxu0 %vm6975_vm1, %v7552_v5  ;;  %6366 = vmatpush3.bf16.xpose.msk.msra.mxu1 %vm6975_vm1, %v7554_v6  ;;  %v8117_v5 = vld [vmem:[%s9303_s1 + $0x20] sm:$0xff]  ;;  %v4717_v6 = vld [vmem:[%s9302_s0 + $0x31] sm:$0xff] }
  0xef   :  { %6321 = vmatprep.subr.msk.bf16.mxu0 %vm6975_vm1, %v7556_v7  ;;  %6369 = vmatprep.subr.msk.bf16.mxu1 %vm6975_vm1, %v7558_v8  ;;  %v4718_v7 = vld [vmem:[%s9302_s0 + $0x39] sm:$0xff]  ;;  %v4749_v8 = vld [vmem:[%s9302_s0 + $0x1e1] sm:$0xff] }
  0xf0   :  { %v8157_v45 = vpack.c.bf16 %v4718_v7, %v4717_v6  ;;  %v8249_v7 = vpack.c.bf16 %v4740_v37, %v4739_v36  ;;  %v4744_v36 = vld [vmem:[%s9302_s0 + $0x171] sm:$0xff]  ;;  %v4775_v37 = vld [vmem:[%s9302_s0 + $0x319] sm:$0xff] }
  0xf6   :  { %6324 = vmatpush3.bf16.xpose.msk.msra.mxu0 %vm6975_vm1, %v7596_v21  ;;  %6372 = vmatpush3.bf16.xpose.msk.msra.mxu1 %vm6975_vm1, %v7598_v22  ;;  %v4750_v21 = vld [vmem:[%s9302_s0 + $0x1e9] sm:$0xff] }
  0xf7   :  { %6327 = vmatprep.subr.msk.bf16.mxu0 %vm6975_vm1, %v8046_v0  ;;  %6375 = vmatprep.subr.msk.bf16.mxu1 %vm6975_vm1, %v8048_v1  ;;  %v4735_v22 = vld [vmem:[%s9302_s0 + $0x109] sm:$0xff]  ;;  %v8159_v19 = vpack.c.bf16 %v4750_v21, %v4749_v8  ;;  %v4723_v21 = vld [vmem:[%s9302_s0 + $0x79] sm:$0xff] }
  0xf8   :  { %v8161_v20 = vpack.c.bf16 %v4736_v48, %v4735_v22  ;;  %v4724_v22 = vld [vmem:[%s9302_s0 + $0x81] sm:$0xff]  ;;  %v4755_v48 = vld [vmem:[%s9302_s0 + $0x229] sm:$0xff] }
  0xfe   :  { %6330 = vmatpush3.bf16.xpose.msk.msra.mxu0 %vm6975_vm1, %v7243_v39  ;;  %6378 = vmatpush3.bf16.xpose.msk.msra.mxu1 %vm6975_vm1, %v7245_v40  ;;  %v4747_v39 = vld [vmem:[%s9302_s0 + $0x1c9] sm:$0xff]  ;;  %v4748_v40 = vld [vmem:[%s9302_s0 + $0x1d1] sm:$0xff] }
  0xff   :  { %6381 = vmatprep.subr.msk.bf16.mxu0 %vm6975_vm1, %v6379_v23  ;;  %6429 = vmatprep.subr.msk.bf16.mxu1 %vm6975_vm1, %v6427_v24  ;;  %v6430_v51 = vpack.c.bf16 %v4748_v40, %v4747_v39  ;;  %v8203_v23 = vpack.c.bf16 %v4752_v62, %v4751_v53  ;;  %v8205_v24 = vpack.c.bf16 %v4738_v11, %v4737_v63  ;;  %v4722_v39 = vld [vmem:[%s9302_s0 + $0x69] sm:$0xff]  ;;  %v4753_v40 = vld [vmem:[%s9302_s0 + $0x211] sm:$0xff] }
 0x100   :  { %v8247_v6 = vpack.c.bf16 %v4754_v35, %v4753_v40  ;;  %v4774_v53 = vld [vmem:[%s9302_s0 + $0x309] sm:$0xff]  ;;  %v8289_v62 = vpack.c.bf16 %v4724_v22, %v4723_v21  ;;  %v8291_v63 = vpack.c.bf16 %v4756_v44, %v4755_v48 }
 0x101   :  { %v4758_v40 = vld [vmem:[%s9302_s0 + $0x249] sm:$0xff] }
 0x102   :  { %v4743_v35 = vld [vmem:[%s9302_s0 + $0x169] sm:$0xff] }
 0x103   :  { %v8337_v22 = vpack.c.bf16 %v4744_v36, %v4743_v35  ;;  %v4727_v44 = vld [vmem:[%s9302_s0 + $0xa9] sm:$0xff] }
 0x105   :  { %5620 = vmatmul.mubr.msk.f32.vlgmr.msra.gmra.mrb[0].mxu0 %vm152_vm0, %v4648_v16  ;;  %5654 = vmatmul.mubr.msk.f32.vlgmr.msra.gmra.mrb[0].mxu1 %vm152_vm0, %v4648_v16  ;;  %v4719_v16 = vld [vmem:[%s9302_s0 + $0x49] sm:$0xff] }
 0x106   :  { %6384 = vmatpush3.bf16.xpose.msk.msra.mxu0 %vm6975_vm1, %v6382_v50  ;;  %6432 = vmatpush3.bf16.xpose.msk.msra.mxu1 %vm6975_vm1, %v6430_v51  ;;  %v8201_v14 = vpack.c.bf16 %v4720_v52, %v4719_v16  ;;  %v4772_v50 = vld [vmem:[%s9302_s0 + $0x2f1] sm:$0xff]  ;;  %v8245_v51 = vpack.c.bf16 %v4722_v39, %v4721_v26  ;;  %v4742_v16 = vld [vmem:[%s9302_s0 + $0x159] sm:$0xff]  ;;  %v4773_v52 = vld [vmem:[%s9302_s0 + $0x301] sm:$0xff] }
 0x107   :  { %6387 = vmatprep.subr.msk.bf16.mxu0 %vm6975_vm1, %v8108_v55  ;;  %6435 = vmatprep.subr.msk.bf16.mxu1 %vm6975_vm1, %v8110_v56  ;;  %v8251_v8 = vpack.c.bf16 %v4772_v50, %v4771_v38  ;;  %v8293_v11 = vpack.c.bf16 %v4742_v16, %v4741_v49  ;;  %v8295_v12 = vpack.c.bf16 %v4774_v53, %v4773_v52  ;;  %v4726_v26 = vld [vmem:[%s9302_s0 + $0x99] sm:$0xff]  ;;  %v4757_v39 = vld [vmem:[%s9302_s0 + $0x241] sm:$0xff]  ;;  %v4728_v49 = vld [vmem:[%s9302_s0 + $0xb1] sm:$0xff] }
 0x108   :  { %5687 = vmatprep.mubr.msk.f32.mxu0 %vm152_vm0, %v8117_v5  ;;  %5721 = vmatprep.mubr.msk.f32.mxu1 %vm152_vm0, %v8117_v5  ;;  %v4776_v38 = vld [vmem:[%s9302_s0 + $0x321] sm:$0xff]  ;;  %v8333_v50 = vpack.c.bf16 %v4726_v26, %v4725_v13  ;;  %v8335_v21 = vpack.c.bf16 %v4758_v40, %v4757_v39  ;;  %v4759_v16 = vld [vmem:[%s9302_s0 + $0x259] sm:$0xff]  ;;  %v4746_v13 = vld [vmem:[%s9302_s0 + $0x189] sm:$0xff]  ;;  %v8377_v40 = vpack.c.bf16 %v4728_v49, %v4727_v44 }
 0x109   :  { %v8339_v48 = vpack.c.bf16 %v4776_v38, %v4775_v37  ;;  %v4760_v52 = vld [vmem:[%s9302_s0 + $0x261] sm:$0xff]  ;;  %v4777_v26 = vld [vmem:[%s9302_s0 + $0x331] sm:$0xff]  ;;  %v4778_v39 = vld [vmem:[%s9302_s0 + $0x339] sm:$0xff] }
 0x10a   :  { %v4745_v53 = vld [vmem:[%s9302_s0 + $0x181] sm:$0xff]  ;;  %v8379_v35 = vpack.c.bf16 %v4760_v52, %v4759_v16  ;;  %v8383_v37 = vpack.c.bf16 %v4778_v39, %v4777_v26  ;;  %v4730_v44 = vld [vmem:[%s9302_s0 + $0xc9] sm:$0xff]  ;;  %v4761_v49 = vld [vmem:[%s9302_s0 + $0x271] sm:$0xff] }
 0x10b   :  { %v8381_v36 = vpack.c.bf16 %v4746_v13, %v4745_v53  ;;  %v4729_v38 = vld [vmem:[%s9302_s0 + $0xc1] sm:$0xff]  ;;  %v4762_v16 = vld [vmem:[%s9302_s0 + $0x279] sm:$0xff]  ;;  %v4996_v26 = vld [vmem:[%s9302_s0 + $0x110] sm:$0xff] }
 0x10c   :  { %v8409_v52 = vpack.c.bf16 %v4730_v44, %v4729_v38  ;;  %v8411_v53 = vpack.c.bf16 %v4762_v16, %v4761_v49  ;;  %v8432_v13 = vld [vmem:[%s9303_s1 + $0x28] sm:$0xff]  ;;  %v5027_v39 = vld [vmem:[%s9302_s0 + $0x2b8] sm:$0xff]  ;;  %v5028_v38 = vld [vmem:[%s9302_s0 + $0x2c0] sm:$0xff] }
 0x10e   :  { %6390 = vmatpush3.bf16.xpose.msk.msra.mxu0 %vm6975_vm1, %v8157_v45  ;;  %6438 = vmatpush3.bf16.xpose.msk.msra.mxu1 %vm6975_vm1, %v8159_v19 }
 0x10f   :  { %6393 = vmatprep.subr.msk.bf16.mxu0 %vm6975_vm1, %v8161_v20  ;;  %6441 = vmatprep.subr.msk.bf16.mxu1 %vm6975_vm1, %v8163_v41 }
 0x116   :  { %6396 = vmatpush3.bf16.xpose.msk.msra.mxu0 %vm6975_vm1, %v8201_v14  ;;  %6444 = vmatpush3.bf16.xpose.msk.msra.mxu1 %vm6975_vm1, %v8203_v23 }
 0x117   :  { %6399 = vmatprep.subr.msk.bf16.mxu0 %vm6975_vm1, %v8205_v24  ;;  %6447 = vmatprep.subr.msk.bf16.mxu1 %vm6975_vm1, %v8207_v25 }
 0x11e   :  { %6402 = vmatpush3.bf16.xpose.msk.msra.mxu0 %vm6975_vm1, %v8245_v51  ;;  %6450 = vmatpush3.bf16.xpose.msk.msra.mxu1 %vm6975_vm1, %v8247_v6 }
 0x11f   :  { %6405 = vmatprep.subr.msk.bf16.mxu0 %vm6975_vm1, %v8249_v7  ;;  %6453 = vmatprep.subr.msk.bf16.mxu1 %vm6975_vm1, %v8251_v8 }
 0x126   :  { %6408 = vmatpush3.bf16.xpose.msk.msra.mxu0 %vm6975_vm1, %v8289_v62  ;;  %6456 = vmatpush3.bf16.xpose.msk.msra.mxu1 %vm6975_vm1, %v8291_v63 }
 0x127   :  { %6411 = vmatprep.subr.msk.bf16.mxu0 %vm6975_vm1, %v8293_v11  ;;  %6459 = vmatprep.subr.msk.bf16.mxu1 %vm6975_vm1, %v8295_v12 }
 0x12e   :  { %6414 = vmatpush3.bf16.xpose.msk.msra.mxu0 %vm6975_vm1, %v8333_v50  ;;  %6462 = vmatpush3.bf16.xpose.msk.msra.mxu1 %vm6975_vm1, %v8335_v21 }
 0x12f   :  { %6417 = vmatprep.subr.msk.bf16.mxu0 %vm6975_vm1, %v8337_v22  ;;  %6465 = vmatprep.subr.msk.bf16.mxu1 %vm6975_vm1, %v8339_v48 }
 0x136   :  { %6420 = vmatpush3.bf16.xpose.msk.msra.mxu0 %vm6975_vm1, %v8377_v40  ;;  %6468 = vmatpush3.bf16.xpose.msk.msra.mxu1 %vm6975_vm1, %v8379_v35 }
 0x137   :  { %6423 = vmatprep.subr.msk.bf16.mxu0 %vm6975_vm1, %v8381_v36  ;;  %6471 = vmatprep.subr.msk.bf16.mxu1 %vm6975_vm1, %v8383_v37 }
 0x13e   :  { %6426 = vmatpush3.bf16.xpose.msk.msra.mxu0 %vm6975_vm1, %v8409_v52  ;;  %6474 = vmatpush3.bf16.xpose.msk.msra.mxu1 %vm6975_vm1, %v8411_v53 }
 0x13f   :  { %6477 = vmatprep.subr.msk.bf16.mxu0 %vm6975_vm1, %v7634_v46  ;;  %6525 = vmatprep.subr.msk.bf16.mxu1 %vm6975_vm1, %v7636_v47  ;;  %v9316_v46 = vld [vmem:[#allocation5_spill] sm:$0xff]  ;;  %v9317_v47 = vld [vmem:[#allocation6_spill] sm:$0xff] }
 0x145   :  { %5688 = vmatmul.mubr.msk.f32.vlgmr.msra.gmra.mrb[0].mxu0 %vm152_vm0, %v8117_v5  ;;  %5722 = vmatmul.mubr.msk.f32.vlgmr.msra.gmra.mrb[0].mxu1 %vm152_vm0, %v8117_v5  ;;  %v4995_v5 = vld [vmem:[%s9302_s0 + $0x108] sm:$0xff] }
 0x146   :  { %6480 = vmatpush3.bf16.xpose.msk.msra.mxu0 %vm6975_vm1, %v7685_v2  ;;  %6528 = vmatpush3.bf16.xpose.msk.msra.mxu1 %vm6975_vm1, %v7687_v3  ;;  %v9318_v2 = vld [vmem:[#allocation7_spill] sm:$0xff]  ;;  %v4876_v3 = vld [vmem:[%s9302_s0 + $0x182] sm:$0xff]  ;;  %v6577_v16 = vpack.c.bf16 %v4996_v26, %v4995_v5 }
 0x147   :  { %6483 = vmatprep.subr.msk.bf16.mxu0 %vm6975_vm1, %v7689_v9  ;;  %6531 = vmatprep.subr.msk.bf16.mxu1 %vm6975_vm1, %v7691_v10  ;;  %v4877_v9 = vld [vmem:[%s9302_s0 + $0x18a] sm:$0xff]  ;;  %v4908_v10 = vld [vmem:[%s9302_s0 + $0x332] sm:$0xff] }
 0x148   :  { %5755 = vmatprep.mubr.msk.f32.mxu0 %vm152_vm0, %v8432_v13  ;;  %5789 = vmatprep.mubr.msk.f32.mxu1 %vm152_vm0, %v8432_v13 }
 0x14e   :  { %6486 = vmatpush3.bf16.xpose.msk.msra.mxu0 %vm6975_vm1, %v7729_v29  ;;  %6534 = vmatpush3.bf16.xpose.msk.msra.mxu1 %vm6975_vm1, %v7731_v30  ;;  %v4909_v29 = vld [vmem:[%s9302_s0 + $0x33a] sm:$0xff]  ;;  %v8522_v30 = vpack.c.bf16 %v4877_v9, %v4876_v3  ;;  %v4980_v3 = vld [vmem:[%s9302_s0 + $0x50] sm:$0xff] }
 0x14f   :  { %6489 = vmatprep.subr.msk.bf16.mxu0 %vm6975_vm1, %v7733_v31  ;;  %6537 = vmatprep.subr.msk.bf16.mxu1 %vm6975_vm1, %v7735_v32  ;;  %v8524_v31 = vpack.c.bf16 %v4909_v29, %v4908_v10  ;;  %v4860_v32 = vld [vmem:[%s9302_s0 + $0xc2] sm:$0xff] }
 0x150   :  { %v5012_v9 = vld [vmem:[%s9302_s0 + $0x200] sm:$0xff]  ;;  %v4998_v29 = vld [vmem:[%s9302_s0 + $0x128] sm:$0xff] }
 0x151   :  { %v4997_v10 = vld [vmem:[%s9302_s0 + $0x120] sm:$0xff] }
 0x156   :  { %6492 = vmatpush3.bf16.xpose.msk.msra.mxu0 %vm6975_vm1, %v7773_v54  ;;  %6540 = vmatpush3.bf16.xpose.msk.msra.mxu1 %vm6975_vm1, %v7775_v57  ;;  %v4861_v54 = vld [vmem:[%s9302_s0 + $0xca] sm:$0xff]  ;;  %v4892_v57 = vld [vmem:[%s9302_s0 + $0x272] sm:$0xff] }
 0x157   :  { %6495 = vmatprep.subr.msk.bf16.mxu0 %vm6975_vm1, %v7777_v58  ;;  %6543 = vmatprep.subr.msk.bf16.mxu1 %vm6975_vm1, %v7779_v59  ;;  %v4893_v58 = vld [vmem:[%s9302_s0 + $0x27a] sm:$0xff]  ;;  %v4993_v59 = vld [vmem:[%s9302_s0 + $0xf0] sm:$0xff] }
 0x15e   :  { %6498 = vmatpush3.bf16.xpose.msk.msra.mxu0 %vm6975_vm1, %v7817_v27  ;;  %6546 = vmatpush3.bf16.xpose.msk.msra.mxu1 %vm6975_vm1, %v7819_v28  ;;  %v4994_v27 = vld [vmem:[%s9302_s0 + $0xf8] sm:$0xff]  ;;  %v5025_v28 = vld [vmem:[%s9302_s0 + $0x2a0] sm:$0xff] }
 0x15f   :  { %6501 = vmatprep.subr.msk.bf16.mxu0 %vm6975_vm1, %v7821_v33  ;;  %6549 = vmatprep.subr.msk.bf16.mxu1 %vm6975_vm1, %v7823_v34  ;;  %v5026_v33 = vld [vmem:[%s9302_s0 + $0x2a8] sm:$0xff]  ;;  %v8562_v34 = vpack.c.bf16 %v4861_v54, %v4860_v32  ;;  %v5029_v32 = vld [vmem:[%s9302_s0 + $0x2d0] sm:$0xff]  ;;  %v5030_v54 = vld [vmem:[%s9302_s0 + $0x2d8] sm:$0xff] }
 0x166   :  { %6504 = vmatpush3.bf16.xpose.msk.msra.mxu0 %vm6975_vm1, %v7861_v15  ;;  %6552 = vmatpush3.bf16.xpose.msk.msra.mxu1 %vm6975_vm1, %v9316_v46  ;;  %v8564_v15 = vpack.c.bf16 %v4893_v58, %v4892_v57  ;;  %v6625_v46 = vpack.c.bf16 %v5028_v38, %v5027_v39 }
 0x167   :  { %6507 = vmatprep.subr.msk.bf16.mxu0 %vm6975_vm1, %v9317_v47  ;;  %6555 = vmatprep.subr.msk.bf16.mxu1 %vm6975_vm1, %v9318_v2  ;;  %v8607_v47 = vld [vmem:[%s9303_s1 + $0x30] sm:$0xff]  ;;  %v4979_v2 = vld [vmem:[%s9302_s0 + $0x48] sm:$0xff] }
 0x168   :  { %v6580_v57 = vpack.c.bf16 %v4980_v3, %v4979_v2  ;;  %v5001_v2 = vld [vmem:[%s9302_s0 + $0x150] sm:$0xff]  ;;  %v5002_v3 = vld [vmem:[%s9302_s0 + $0x158] sm:$0xff] }
 0x16e   :  { %6510 = vmatpush3.bf16.xpose.msk.msra.mxu0 %vm6975_vm1, %v7905_v60  ;;  %6558 = vmatpush3.bf16.xpose.msk.msra.mxu1 %vm6975_vm1, %v7907_v61  ;;  %v4977_v60 = vld [vmem:[%s9302_s0 + $0x30] sm:$0xff]  ;;  %v4978_v61 = vld [vmem:[%s9302_s0 + $0x38] sm:$0xff] }
 0x16f   :  { %6513 = vmatprep.subr.msk.bf16.mxu0 %vm6975_vm1, %v7909_v18  ;;  %6561 = vmatprep.subr.msk.bf16.mxu1 %vm6975_vm1, %v7911_v17  ;;  %v6571_v17 = vpack.c.bf16 %v4994_v27, %v4993_v59  ;;  %v6619_v18 = vpack.c.bf16 %v5026_v33, %v5025_v28  ;;  %v6574_v44 = vpack.c.bf16 %v4978_v61, %v4977_v60  ;;  %v4981_v28 = vld [vmem:[%s9302_s0 + $0x60] sm:$0xff]  ;;  %v4982_v33 = vld [vmem:[%s9302_s0 + $0x68] sm:$0xff]  ;;  %v4999_v60 = vld [vmem:[%s9302_s0 + $0x138] sm:$0xff] }
 0x170   :  { %v6583_v59 = vpack.c.bf16 %v4998_v29, %v4997_v10  ;;  %v6631_v27 = vpack.c.bf16 %v5030_v54, %v5029_v32  ;;  %v5000_v61 = vld [vmem:[%s9302_s0 + $0x140] sm:$0xff]  ;;  %v6586_v5 = vpack.c.bf16 %v4982_v33, %v4981_v28  ;;  %v6595_v32 = vpack.c.bf16 %v5002_v3, %v5001_v2  ;;  %v5003_v28 = vld [vmem:[%s9302_s0 + $0x168] sm:$0xff]  ;;  %v5004_v33 = vld [vmem:[%s9302_s0 + $0x170] sm:$0xff] }
 0x171   :  { %v6589_v39 = vpack.c.bf16 %v5000_v61, %v4999_v60  ;;  %v5021_v2 = vld [vmem:[%s9302_s0 + $0x270] sm:$0xff]  ;;  %v5022_v3 = vld [vmem:[%s9302_s0 + $0x278] sm:$0xff] }
 0x176   :  { %6516 = vmatpush3.bf16.xpose.msk.msra.mxu0 %vm6975_vm1, %v7937_v42  ;;  %6564 = vmatpush3.bf16.xpose.msk.msra.mxu1 %vm6975_vm1, %v7939_v43  ;;  %v5009_v42 = vld [vmem:[%s9302_s0 + $0x1e0] sm:$0xff]  ;;  %v5010_v43 = vld [vmem:[%s9302_s0 + $0x1e8] sm:$0xff] }
 0x177   :  { %6519 = vmatprep.subr.msk.bf16.mxu0 %vm6975_vm1, %v8522_v30  ;;  %6567 = vmatprep.subr.msk.bf16.mxu1 %vm6975_vm1, %v8524_v31  ;;  %v6622_v49 = vpack.c.bf16 %v5010_v43, %v5009_v42  ;;  %v5031_v42 = vld [vmem:[%s9302_s0 + $0x2e8] sm:$0xff]  ;;  %v5032_v43 = vld [vmem:[%s9302_s0 + $0x2f0] sm:$0xff] }
 0x178   :  { %v6637_v38 = vpack.c.bf16 %v5032_v43, %v5031_v42  ;;  %v6601_v42 = vpack.c.bf16 %v5004_v33, %v5003_v28 }
 0x17e   :  { %6522 = vmatpush3.bf16.xpose.msk.msra.mxu0 %vm6975_vm1, %v8562_v34  ;;  %6570 = vmatpush3.bf16.xpose.msk.msra.mxu1 %vm6975_vm1, %v8564_v15 }
 0x17f   :  { %6573 = vmatprep.subr.msk.bf16.mxu0 %vm6975_vm1, %v6571_v17  ;;  %6621 = vmatprep.subr.msk.bf16.mxu1 %vm6975_vm1, %v6619_v18  ;;  %v5013_v17 = vld [vmem:[%s9302_s0 + $0x210] sm:$0xff]  ;;  %v5014_v18 = vld [vmem:[%s9302_s0 + $0x218] sm:$0xff] }
 0x180   :  { %v6634_v26 = vpack.c.bf16 %v5014_v18, %v5013_v17  ;;  %v5035_v17 = vld [vmem:[%s9302_s0 + $0x318] sm:$0xff]  ;;  %v5036_v18 = vld [vmem:[%s9302_s0 + $0x320] sm:$0xff] }
 0x181   :  { %v6649_v43 = vpack.c.bf16 %v5036_v18, %v5035_v17  ;;  %v8832_v17 = vld [vmem:[%s9303_s1 + $0x38] sm:$0xff] }
 0x185   :  { %5756 = vmatmul.mubr.msk.f32.vlgmr.msra.gmra.mrb[0].mxu0 %vm152_vm0, %v8432_v13  ;;  %5790 = vmatmul.mubr.msk.f32.vlgmr.msra.gmra.mrb[0].mxu1 %vm152_vm0, %v8432_v13  ;;  %v5011_v13 = vld [vmem:[%s9302_s0 + $0x1f8] sm:$0xff] }
 0x186   :  { %6576 = vmatpush3.bf16.xpose.msk.msra.mxu0 %vm6975_vm1, %v6574_v44  ;;  %6624 = vmatpush3.bf16.xpose.msk.msra.mxu1 %vm6975_vm1, %v6622_v49  ;;  %v6628_v58 = vpack.c.bf16 %v5012_v9, %v5011_v13  ;;  %v4983_v44 = vld [vmem:[%s9302_s0 + $0x78] sm:$0xff]  ;;  %v4984_v49 = vld [vmem:[%s9302_s0 + $0x80] sm:$0xff]  ;;  %v5034_v9 = vld [vmem:[%s9302_s0 + $0x308] sm:$0xff] }
 0x187   :  { %6579 = vmatprep.subr.msk.bf16.mxu0 %vm6975_vm1, %v6577_v16  ;;  %6627 = vmatprep.subr.msk.bf16.mxu1 %vm6975_vm1, %v6625_v46  ;;  %v5015_v16 = vld [vmem:[%s9302_s0 + $0x228] sm:$0xff]  ;;  %v5016_v46 = vld [vmem:[%s9302_s0 + $0x230] sm:$0xff]  ;;  %v5033_v13 = vld [vmem:[%s9302_s0 + $0x300] sm:$0xff]  ;;  %v6592_v10 = vpack.c.bf16 %v4984_v49, %v4983_v44 }
 0x188   :  { %5823 = vmatprep.mubr.msk.f32.mxu0 %vm152_vm0, %v8607_v47  ;;  %5857 = vmatprep.mubr.msk.f32.mxu1 %vm152_vm0, %v8607_v47  ;;  %v6640_v29 = vpack.c.bf16 %v5016_v46, %v5015_v16  ;;  %v6643_v54 = vpack.c.bf16 %v5034_v9, %v5033_v13  ;;  %v4989_v16 = vld [vmem:[%s9302_s0 + $0xc0] sm:$0xff]  ;;  %v4990_v46 = vld [vmem:[%s9302_s0 + $0xc8] sm:$0xff]  ;;  %v5007_v13 = vld [vmem:[%s9302_s0 + $0x198] sm:$0xff] }
 0x189   :  { %v5040_v9 = vld [vmem:[%s9302_s0 + $0x350] sm:$0xff] }
 0x18e   :  { %6582 = vmatpush3.bf16.xpose.msk.msra.mxu0 %vm6975_vm1, %v6580_v57  ;;  %6630 = vmatpush3.bf16.xpose.msk.msra.mxu1 %vm6975_vm1, %v6628_v58  ;;  %v4985_v57 = vld [vmem:[%s9302_s0 + $0x90] sm:$0xff]  ;;  %v4986_v58 = vld [vmem:[%s9302_s0 + $0x98] sm:$0xff] }
 0x18f   :  { %6585 = vmatprep.subr.msk.bf16.mxu0 %vm6975_vm1, %v6583_v59  ;;  %6633 = vmatprep.subr.msk.bf16.mxu1 %vm6975_vm1, %v6631_v27  ;;  %v5017_v59 = vld [vmem:[%s9302_s0 + $0x240] sm:$0xff]  ;;  %v5018_v27 = vld [vmem:[%s9302_s0 + $0x248] sm:$0xff]  ;;  %v6598_v60 = vpack.c.bf16 %v4986_v58, %v4985_v57  ;;  %v4991_v57 = vld [vmem:[%s9302_s0 + $0xd8] sm:$0xff] }
 0x190   :  { %v6646_v61 = vpack.c.bf16 %v5018_v27, %v5017_v59  ;;  %v4992_v58 = vld [vmem:[%s9302_s0 + $0xe0] sm:$0xff]  ;;  %v5023_v59 = vld [vmem:[%s9302_s0 + $0x288] sm:$0xff]  ;;  %v5024_v27 = vld [vmem:[%s9302_s0 + $0x290] sm:$0xff] }
 0x191   :  { %v6616_v28 = vpack.c.bf16 %v4992_v58, %v4991_v57  ;;  %v6664_v33 = vpack.c.bf16 %v5024_v27, %v5023_v59  ;;  %v5294_v57 = vld [vmem:[%s9302_s0 + $0x2f2] sm:$0xff] }
 0x196   :  { %6588 = vmatpush3.bf16.xpose.msk.msra.mxu0 %vm6975_vm1, %v6586_v5  ;;  %6636 = vmatpush3.bf16.xpose.msk.msra.mxu1 %vm6975_vm1, %v6634_v26  ;;  %v4987_v5 = vld [vmem:[%s9302_s0 + $0xa8] sm:$0xff]  ;;  %v4988_v26 = vld [vmem:[%s9302_s0 + $0xb0] sm:$0xff] }
 0x197   :  { %6591 = vmatprep.subr.msk.bf16.mxu0 %vm6975_vm1, %v6589_v39  ;;  %6639 = vmatprep.subr.msk.bf16.mxu1 %vm6975_vm1, %v6637_v38  ;;  %v5019_v39 = vld [vmem:[%s9302_s0 + $0x258] sm:$0xff]  ;;  %v5020_v38 = vld [vmem:[%s9302_s0 + $0x260] sm:$0xff]  ;;  %v6604_v44 = vpack.c.bf16 %v4988_v26, %v4987_v5 }
 0x198   :  { %v6652_v49 = vpack.c.bf16 %v5020_v38, %v5019_v39  ;;  %v5242_v5 = vld [vmem:[%s9302_s0 + $0x52] sm:$0xff]  ;;  %v5273_v26 = vld [vmem:[%s9302_s0 + $0x1fa] sm:$0xff]  ;;  %v5274_v39 = vld [vmem:[%s9302_s0 + $0x202] sm:$0xff] }
 0x199   :  { %v5259_v38 = vld [vmem:[%s9302_s0 + $0x122] sm:$0xff] }
 0x19e   :  { %6594 = vmatpush3.bf16.xpose.msk.msra.mxu0 %vm6975_vm1, %v6592_v10  ;;  %6642 = vmatpush3.bf16.xpose.msk.msra.mxu1 %vm6975_vm1, %v6640_v29  ;;  %v6610_v10 = vpack.c.bf16 %v4990_v46, %v4989_v16  ;;  %v6658_v29 = vpack.c.bf16 %v5022_v3, %v5021_v2  ;;  %v5292_v16 = vld [vmem:[%s9302_s0 + $0x2da] sm:$0xff]  ;;  %v6820_v2 = vpack.c.bf16 %v5274_v39, %v5273_v26 }
 0x19f   :  { %6597 = vmatprep.subr.msk.bf16.mxu0 %vm6975_vm1, %v6595_v32  ;;  %6645 = vmatprep.subr.msk.bf16.mxu1 %vm6975_vm1, %v6643_v54 }
 0x1a6   :  { %6600 = vmatpush3.bf16.xpose.msk.msra.mxu0 %vm6975_vm1, %v6598_v60  ;;  %6648 = vmatpush3.bf16.xpose.msk.msra.mxu1 %vm6975_vm1, %v6646_v61 }
 0x1a7   :  { %6603 = vmatprep.subr.msk.bf16.mxu0 %vm6975_vm1, %v6601_v42  ;;  %6651 = vmatprep.subr.msk.bf16.mxu1 %vm6975_vm1, %v6649_v43  ;;  %v8998_v42 = vld [vmem:[%s9303_s1 + $0x40] sm:$0xff]  ;;  %v5241_v43 = vld [vmem:[%s9302_s0 + $0x4a] sm:$0xff] }
 0x1a8   :  { %v6772_v46 = vpack.c.bf16 %v5242_v5, %v5241_v43  ;;  %v5254_v5 = vld [vmem:[%s9302_s0 + $0xe2] sm:$0xff] }
 0x1ae   :  { %6606 = vmatpush3.bf16.xpose.msk.msra.mxu0 %vm6975_vm1, %v6604_v44  ;;  %6654 = vmatpush3.bf16.xpose.msk.msra.mxu1 %vm6975_vm1, %v6652_v49  ;;  %v5260_v44 = vld [vmem:[%s9302_s0 + $0x12a] sm:$0xff]  ;;  %v5291_v49 = vld [vmem:[%s9302_s0 + $0x2d2] sm:$0xff] }
 0x1af   :  { %6609 = vmatprep.subr.msk.bf16.mxu0 %vm6975_vm1, %v8046_v0  ;;  %6657 = vmatprep.subr.msk.bf16.mxu1 %vm6975_vm1, %v8048_v1  ;;  %v5008_v0 = vld [vmem:[%s9302_s0 + $0x1a0] sm:$0xff]  ;;  %v5039_v1 = vld [vmem:[%s9302_s0 + $0x348] sm:$0xff]  ;;  %v6775_v3 = vpack.c.bf16 %v5260_v44, %v5259_v38 }
 0x1b0   :  { %v6613_v32 = vpack.c.bf16 %v5008_v0, %v5007_v13  ;;  %v6661_v54 = vpack.c.bf16 %v5040_v9, %v5039_v1  ;;  %v6823_v13 = vpack.c.bf16 %v5292_v16, %v5291_v49  ;;  %v5243_v0 = vld [vmem:[%s9302_s0 + $0x62] sm:$0xff]  ;;  %v5244_v1 = vld [vmem:[%s9302_s0 + $0x6a] sm:$0xff]  ;;  %v5275_v9 = vld [vmem:[%s9302_s0 + $0x212] sm:$0xff] }
 0x1b1   :  { %v6778_v58 = vpack.c.bf16 %v5244_v1, %v5243_v0  ;;  %v3786_v38 = vld [vmem:[%s9305_s3 + $0x8] sm:$0x3f]  ;;  %v3785_v44 = vld [vmem:[%s9305_s3] sm:$0x3f]  ;;  %v3796_v16 = vld [vmem:[%s9305_s3 + $0x58] sm:$0x3f] }
 0x1b2   :  { %v3794_v49 = vld [vmem:[%s9305_s3 + $0x48] sm:$0x3f] }
 0x1b6   :  { %6612 = vmatpush3.bf16.xpose.msk.msra.mxu0 %vm6975_vm1, %v6610_v10  ;;  %6660 = vmatpush3.bf16.xpose.msk.msra.mxu1 %vm6975_vm1, %v6658_v29  ;;  %v5276_v10 = vld [vmem:[%s9302_s0 + $0x21a] sm:$0xff] }
 0x1b7   :  { %6615 = vmatprep.subr.msk.bf16.mxu0 %vm6975_vm1, %v6613_v32  ;;  %6663 = vmatprep.subr.msk.bf16.mxu1 %vm6975_vm1, %v6661_v54  ;;  %v5261_v29 = vld [vmem:[%s9302_s0 + $0x13a] sm:$0xff]  ;;  %v5262_v32 = vld [vmem:[%s9302_s0 + $0x142] sm:$0xff]  ;;  %v5293_v54 = vld [vmem:[%s9302_s0 + $0x2ea] sm:$0xff]  ;;  %v6826_v59 = vpack.c.bf16 %v5276_v10, %v5275_v9 }
 0x1b8   :  { %v6781_v27 = vpack.c.bf16 %v5262_v32, %v5261_v29 }
 0x1be   :  { %6618 = vmatpush3.bf16.xpose.msk.msra.mxu0 %vm6975_vm1, %v6616_v28  ;;  %6666 = vmatpush3.bf16.xpose.msk.msra.mxu1 %vm6975_vm1, %v6664_v33  ;;  %v6829_v28 = vpack.c.bf16 %v5294_v57, %v5293_v54  ;;  %v5245_v33 = vld [vmem:[%s9302_s0 + $0x7a] sm:$0xff] }
 0x1bf   :  { %6669 = vmatprep.subr.msk.bf16.mxu0 %vm6975_vm1, %v8108_v55  ;;  %6717 = vmatprep.subr.msk.bf16.mxu1 %vm6975_vm1, %v8110_v56  ;;  %v3678_v55 = vld [vmem:[%s9304_s2] sm:$0xff]  ;;  %v6932_v56 = vmov 0  }
 0x1c0   :  { %6907 = vset.pattern.permute.xlu0 %v6932_v56  ;;  %v5278_v56 = vld [vmem:[%s9302_s0 + $0x232] sm:$0xff] }
 0x1c1   :  { %3681 = vperm.xlu0 %6907, %v3678_v55   ;;  %v5277_v55 = vld [vmem:[%s9302_s0 + $0x22a] sm:$0xff] }
 0x1c5   :  { %5824 = vmatmul.mubr.msk.f32.vlgmr.msra.gmra.mrb[0].mxu0 %vm152_vm0, %v8607_v47  ;;  %5858 = vmatmul.mubr.msk.f32.vlgmr.msra.gmra.mrb[0].mxu1 %vm152_vm0, %v8607_v47 }
 0x1c6   :  { %6672 = vmatpush3.bf16.xpose.msk.msra.mxu0 %vm6975_vm1, %v8157_v45  ;;  %6720 = vmatpush3.bf16.xpose.msk.msra.mxu1 %vm6975_vm1, %v8159_v19  ;;  %v5138_v45 = vld [vmem:[%s9302_s0 + $0x199] sm:$0xff]  ;;  %v5139_v19 = vld [vmem:[%s9302_s0 + $0x1a1] sm:$0xff] }
 0x1c7   :  { %6675 = vmatprep.subr.msk.bf16.mxu0 %vm6975_vm1, %v8161_v20  ;;  %6723 = vmatprep.subr.msk.bf16.mxu1 %vm6975_vm1, %v8163_v41  ;;  %v5170_v20 = vld [vmem:[%s9302_s0 + $0x349] sm:$0xff]  ;;  %v5171_v41 = vld [vmem:[%s9302_s0 + $0x351] sm:$0xff] }
 0x1c8   :  { %5891 = vmatprep.mubr.msk.f32.mxu0 %vm152_vm0, %v8832_v17  ;;  %5925 = vmatprep.mubr.msk.f32.mxu1 %vm152_vm0, %v8832_v17 }
 0x1ce   :  { %6678 = vmatpush3.bf16.xpose.msk.msra.mxu0 %vm6975_vm1, %v8201_v14  ;;  %6726 = vmatpush3.bf16.xpose.msk.msra.mxu1 %vm6975_vm1, %v8203_v23  ;;  %v6709_v14 = vpack.c.bf16 %v5139_v19, %v5138_v45  ;;  %v6757_v23 = vpack.c.bf16 %v5171_v41, %v5170_v20  ;;  %v5263_v45 = vld [vmem:[%s9302_s0 + $0x152] sm:$0xff]  ;;  %v5264_v19 = vld [vmem:[%s9302_s0 + $0x15a] sm:$0xff]  ;;  %v5295_v20 = vld [vmem:[%s9302_s0 + $0x302] sm:$0xff] }
 0x1cf   :  { %6681 = vmatprep.subr.msk.bf16.mxu0 %vm6975_vm1, %v8205_v24  ;;  %6729 = vmatprep.subr.msk.bf16.mxu1 %vm6975_vm1, %v8207_v25  ;;  %v5122_v24 = vld [vmem:[%s9302_s0 + $0xd9] sm:$0xff]  ;;  %v5123_v25 = vld [vmem:[%s9302_s0 + $0xe1] sm:$0xff]  ;;  %v5296_v41 = vld [vmem:[%s9302_s0 + $0x30a] sm:$0xff] }
 0x1d6   :  { %6684 = vmatpush3.bf16.xpose.msk.msra.mxu0 %vm6975_vm1, %v8245_v51  ;;  %6732 = vmatpush3.bf16.xpose.msk.msra.mxu1 %vm6975_vm1, %v8247_v6  ;;  %v5154_v51 = vld [vmem:[%s9302_s0 + $0x289] sm:$0xff]  ;;  %v5155_v6 = vld [vmem:[%s9302_s0 + $0x291] sm:$0xff] }
 0x1d7   :  { %6687 = vmatprep.subr.msk.bf16.mxu0 %vm6975_vm1, %v8249_v7  ;;  %6735 = vmatprep.subr.msk.bf16.mxu1 %vm6975_vm1, %v8251_v8  ;;  %v5255_v7 = vld [vmem:[%s9302_s0 + $0xf2] sm:$0xff]  ;;  %v5256_v8 = vld [vmem:[%s9302_s0 + $0xfa] sm:$0xff] }
 0x1de   :  { %6690 = vmatpush3.bf16.xpose.msk.msra.mxu0 %vm6975_vm1, %v8289_v62  ;;  %6738 = vmatpush3.bf16.xpose.msk.msra.mxu1 %vm6975_vm1, %v8291_v63  ;;  %v5287_v62 = vld [vmem:[%s9302_s0 + $0x2a2] sm:$0xff]  ;;  %v5288_v63 = vld [vmem:[%s9302_s0 + $0x2aa] sm:$0xff] }
 0x1df   :  { %6693 = vmatprep.subr.msk.bf16.mxu0 %vm6975_vm1, %v8293_v11  ;;  %6741 = vmatprep.subr.msk.bf16.mxu1 %vm6975_vm1, %v8295_v12  ;;  %v6712_v11 = vpack.c.bf16 %v5123_v25, %v5122_v24  ;;  %v6760_v12 = vpack.c.bf16 %v5155_v6, %v5154_v51  ;;  %v6787_v24 = vpack.c.bf16 %v5264_v19, %v5263_v45  ;;  %v5247_v51 = vld [vmem:[%s9302_s0 + $0x92] sm:$0xff]  ;;  %v5248_v6 = vld [vmem:[%s9302_s0 + $0x9a] sm:$0xff] }
 0x1e0   :  { %v6835_v25 = vpack.c.bf16 %v5296_v41, %v5295_v20 }
 0x1e6   :  { %6696 = vmatpush3.bf16.xpose.msk.msra.mxu0 %vm6975_vm1, %v8333_v50  ;;  %6744 = vmatpush3.bf16.xpose.msk.msra.mxu1 %vm6975_vm1, %v8335_v21  ;;  %v6763_v50 = vpack.c.bf16 %v5256_v8, %v5255_v7  ;;  %v6811_v21 = vpack.c.bf16 %v5288_v63, %v5287_v62  ;;  %v5279_v7 = vld [vmem:[%s9302_s0 + $0x242] sm:$0xff]  ;;  %v5280_v8 = vld [vmem:[%s9302_s0 + $0x24a] sm:$0xff]  ;;  %v5266_v63 = vld [vmem:[%s9302_s0 + $0x172] sm:$0xff] }
 0x1e7   :  { %6699 = vmatprep.subr.msk.bf16.mxu0 %vm6975_vm1, %v8337_v22  ;;  %6747 = vmatprep.subr.msk.bf16.mxu1 %vm6975_vm1, %v8339_v48  ;;  %v5239_v22 = vld [vmem:[%s9302_s0 + $0x32] sm:$0xff]  ;;  %v5240_v48 = vld [vmem:[%s9302_s0 + $0x3a] sm:$0xff]  ;;  %v5265_v62 = vld [vmem:[%s9302_s0 + $0x16a] sm:$0xff] }
 0x1e8   :  { %v6766_v47 = vpack.c.bf16 %v5240_v48, %v5239_v22  ;;  %v6793_v22 = vpack.c.bf16 %v5266_v63, %v5265_v62  ;;  %v3790_v62 = vld [vmem:[%s9305_s3 + $0x28] sm:$0x3f] }
 0x1ee   :  { %6702 = vmatpush3.bf16.xpose.msk.msra.mxu0 %vm6975_vm1, %v8377_v40  ;;  %6750 = vmatpush3.bf16.xpose.msk.msra.mxu1 %vm6975_vm1, %v8379_v35  ;;  %v5271_v40 = vld [vmem:[%s9302_s0 + $0x1e2] sm:$0xff]  ;;  %v5272_v35 = vld [vmem:[%s9302_s0 + $0x1ea] sm:$0xff] }
 0x1ef   :  { %6705 = vmatprep.subr.msk.bf16.mxu0 %vm6975_vm1, %v8381_v36  ;;  %6753 = vmatprep.subr.msk.bf16.mxu1 %vm6975_vm1, %v8383_v37  ;;  %v5257_v36 = vld [vmem:[%s9302_s0 + $0x10a] sm:$0xff]  ;;  %v5258_v37 = vld [vmem:[%s9302_s0 + $0x112] sm:$0xff]  ;;  %v6814_v18 = vpack.c.bf16 %v5272_v35, %v5271_v40 }
 0x1f0   :  { %v6769_v60 = vpack.c.bf16 %v5258_v37, %v5257_v36  ;;  %v5249_v40 = vld [vmem:[%s9302_s0 + $0xaa] sm:$0xff]  ;;  %v5250_v35 = vld [vmem:[%s9302_s0 + $0xb2] sm:$0xff]  ;;  %v5281_v36 = vld [vmem:[%s9302_s0 + $0x25a] sm:$0xff] }
 0x1f1   :  { %v5282_v37 = vld [vmem:[%s9302_s0 + $0x262] sm:$0xff] }
 0x1f6   :  { %6708 = vmatpush3.bf16.xpose.msk.msra.mxu0 %vm6975_vm1, %v8409_v52  ;;  %6756 = vmatpush3.bf16.xpose.msk.msra.mxu1 %vm6975_vm1, %v8411_v53  ;;  %v5289_v52 = vld [vmem:[%s9302_s0 + $0x2ba] sm:$0xff]  ;;  %v5290_v53 = vld [vmem:[%s9302_s0 + $0x2c2] sm:$0xff] }
 0x1f7   :  { %6711 = vmatprep.subr.msk.bf16.mxu0 %vm6975_vm1, %v6709_v14  ;;  %6759 = vmatprep.subr.msk.bf16.mxu1 %vm6975_vm1, %v6757_v23  ;;  %v6817_v61 = vpack.c.bf16 %v5290_v53, %v5289_v52  ;;  %v6832_v23 = vpack.c.bf16 %v5278_v56, %v5277_v55  ;;  %v6796_v52 = vpack.c.bf16 %v5250_v35, %v5249_v40 }
 0x1f8   :  { %v6844_v53 = vpack.c.bf16 %v5282_v37, %v5281_v36 }
 0x1fe   :  { %6714 = vmatpush3.bf16.xpose.msk.msra.mxu0 %vm6975_vm1, %v6712_v11  ;;  %6762 = vmatpush3.bf16.xpose.msk.msra.mxu1 %vm6975_vm1, %v6760_v12  ;;  %v5297_v11 = vld [vmem:[%s9302_s0 + $0x31a] sm:$0xff]  ;;  %v5298_v12 = vld [vmem:[%s9302_s0 + $0x322] sm:$0xff] }
 0x1ff   :  { %6765 = vmatprep.subr.msk.bf16.mxu0 %vm6975_vm1, %v6763_v50  ;;  %6813 = vmatprep.subr.msk.bf16.mxu1 %vm6975_vm1, %v6811_v21  ;;  %v6790_v50 = vpack.c.bf16 %v5248_v6, %v5247_v51  ;;  %v6838_v21 = vpack.c.bf16 %v5280_v8, %v5279_v7  ;;  %v6841_v48 = vpack.c.bf16 %v5298_v12, %v5297_v11  ;;  %v3795_v6 = vld [vmem:[%s9305_s3 + $0x50] sm:$0x3f] }
 0x205   :  { %5892 = vmatmul.mubr.msk.f32.vlgmr.msra.gmra.mrb[0].mxu0 %vm152_vm0, %v8832_v17  ;;  %5926 = vmatmul.mubr.msk.f32.vlgmr.msra.gmra.mrb[0].mxu1 %vm152_vm0, %v8832_v17  ;;  %v5246_v17 = vld [vmem:[%s9302_s0 + $0x82] sm:$0xff] }
 0x206   :  { %6768 = vmatpush3.bf16.xpose.msk.msra.mxu0 %vm6975_vm1, %v6766_v47  ;;  %6816 = vmatpush3.bf16.xpose.msk.msra.mxu1 %vm6975_vm1, %v6814_v18  ;;  %v6784_v14 = vpack.c.bf16 %v5246_v17, %v5245_v33  ;;  %v5269_v47 = vld [vmem:[%s9302_s0 + $0x19a] sm:$0xff]  ;;  %v5270_v18 = vld [vmem:[%s9302_s0 + $0x1a2] sm:$0xff] }
 0x207   :  { %6771 = vmatprep.subr.msk.bf16.mxu0 %vm6975_vm1, %v6769_v60  ;;  %6819 = vmatprep.subr.msk.bf16.mxu1 %vm6975_vm1, %v6817_v61  ;;  %v5301_v60 = vld [vmem:[%s9302_s0 + $0x34a] sm:$0xff]  ;;  %v6805_v61 = vpack.c.bf16 %v5270_v18, %v5269_v47 }
 0x208   :  { %5959 = vmatprep.mubr.msk.f32.mxu0 %vm152_vm0, %v8998_v42  ;;  %5993 = vmatprep.mubr.msk.f32.mxu1 %vm152_vm0, %v8998_v42 }
 0x20e   :  { %6774 = vmatpush3.bf16.xpose.msk.msra.mxu0 %vm6975_vm1, %v6772_v46  ;;  %6822 = vmatpush3.bf16.xpose.msk.msra.mxu1 %vm6975_vm1, %v6820_v2 }
 0x20f   :  { %6777 = vmatprep.subr.msk.bf16.mxu0 %vm6975_vm1, %v6775_v3  ;;  %6825 = vmatprep.subr.msk.bf16.mxu1 %vm6975_vm1, %v6823_v13 }
 0x216   :  { %6780 = vmatpush3.bf16.xpose.msk.msra.mxu0 %vm6975_vm1, %v6778_v58  ;;  %6828 = vmatpush3.bf16.xpose.msk.msra.mxu1 %vm6975_vm1, %v6826_v59 }
 0x217   :  { %6783 = vmatprep.subr.msk.bf16.mxu0 %vm6975_vm1, %v6781_v27  ;;  %6831 = vmatprep.subr.msk.bf16.mxu1 %vm6975_vm1, %v6829_v28 }
 0x21e   :  { %6786 = vmatpush3.bf16.xpose.msk.msra.mxu0 %vm6975_vm1, %v6784_v14  ;;  %6834 = vmatpush3.bf16.xpose.msk.msra.mxu1 %vm6975_vm1, %v6832_v23 }
 0x21f   :  { %6789 = vmatprep.subr.msk.bf16.mxu0 %vm6975_vm1, %v6787_v24  ;;  %6837 = vmatprep.subr.msk.bf16.mxu1 %vm6975_vm1, %v6835_v25  ;;  %v3787_v25 = vld [vmem:[%s9305_s3 + $0x10] sm:$0x3f] }
 0x226   :  { %6792 = vmatpush3.bf16.xpose.msk.msra.mxu0 %vm6975_vm1, %v6790_v50  ;;  %6840 = vmatpush3.bf16.xpose.msk.msra.mxu1 %vm6975_vm1, %v6838_v21  ;;  %v3798_v21 = vld [vmem:[%s9305_s3 + $0x68] sm:$0x3f] }
 0x227   :  { %6795 = vmatprep.subr.msk.bf16.mxu0 %vm6975_vm1, %v6793_v22  ;;  %6843 = vmatprep.subr.msk.bf16.mxu1 %vm6975_vm1, %v6841_v48 }
 0x22e   :  { %6798 = vmatpush3.bf16.xpose.msk.msra.mxu0 %vm6975_vm1, %v6796_v52  ;;  %6846 = vmatpush3.bf16.xpose.msk.msra.mxu1 %vm6975_vm1, %v6844_v53 }
 0x22f   :  { %6801 = vmatprep.subr.msk.bf16.mxu0 %vm6975_vm1, %v8522_v30  ;;  %6849 = vmatprep.subr.msk.bf16.mxu1 %vm6975_vm1, %v8524_v31  ;;  %v5302_v30 = vld [vmem:[%s9302_s0 + $0x352] sm:$0xff]  ;;  %v5253_v31 = vld [vmem:[%s9302_s0 + $0xda] sm:$0xff] }
 0x230   :  { %v6853_v43 = vpack.c.bf16 %v5302_v30, %v5301_v60  ;;  %v6808_v26 = vpack.c.bf16 %v5254_v5, %v5253_v31 }
 0x236   :  { %6804 = vmatpush3.bf16.xpose.msk.msra.mxu0 %vm6975_vm1, %v8562_v34  ;;  %6852 = vmatpush3.bf16.xpose.msk.msra.mxu1 %vm6975_vm1, %v8564_v15  ;;  %v5285_v34 = vld [vmem:[%s9302_s0 + $0x28a] sm:$0xff]  ;;  %v5286_v15 = vld [vmem:[%s9302_s0 + $0x292] sm:$0xff] }
 0x237   :  { %6807 = vmatprep.subr.msk.bf16.mxu0 %vm6975_vm1, %v6805_v61  ;;  %6855 = vmatprep.subr.msk.bf16.mxu1 %vm6975_vm1, %v6853_v43  ;;  %v6856_v39 = vpack.c.bf16 %v5286_v15, %v5285_v34 }
 0x23e   :  { %6810 = vmatpush3.bf16.xpose.msk.msra.mxu0 %vm6975_vm1, %v6808_v26  ;;  %6858 = vmatpush3.bf16.xpose.msk.msra.mxu1 %vm6975_vm1, %v6856_v39 }
 0x23f   :  { %3808 = vmatprep.subr.mxu1 %v3786_v38  ;;  %4088 = vmatprep.subr.mxu0 %v3794_v49 }
 0x240   :  { %v3682_v46 = vpop.permute.xlu0 %3681 }
 0x245   :  { %5960 = vmatmul.mubr.msk.f32.vlgmr.msra.gmra.mrb[0].mxu0 %vm152_vm0, %v8998_v42  ;;  %5994 = vmatmul.mubr.msk.f32.vlgmr.msra.gmra.mrb[0].mxu1 %vm152_vm0, %v8998_v42  ;;  %v3788_v42 = vld [vmem:[%s9305_s3 + $0x18] sm:$0x3f] }
 0x246   :  { %3809 = vmatpush1.xpose.msra.mxu1 %v3785_v44  ;;  %4089 = vmatpush1.xpose.msra.mxu0 %v3793_v4  ;;  %v3789_v44 = vld [vmem:[%s9305_s3 + $0x20] sm:$0x3f] }
 0x247   :  { %3878 = vmatprep.subr.mxu1 %v3788_v42  ;;  %4158 = vmatprep.subr.mxu0 %v3796_v16  ;;  %v3797_v4 = vld [vmem:[%s9305_s3 + $0x60] sm:$0x3f]  ;;  %v3792_v16 = vld [vmem:[%s9305_s3 + $0x38] sm:$0x3f] }
 0x318   :  { %v3598_v2 = vpop.f32.mrb[0].mxu0  ;;  %v3669_v3 = vpop.f32.mrb[0].mxu1 }
 0x319   :  { %v3684_v13 = vadd.f32 %v3682_v46, %v3598_v2  ;;  %v3686_v0 = vadd.f32 %v3682_v46, %v3669_v3  ;;  %v3600_v1 = vpop.f32.mrb[1].mxu0  ;;  %v3671_v9 = vpop.f32.mrb[1].mxu1  ;;  %v3791_v2 = vld [vmem:[%s9305_s3 + $0x30] sm:$0x3f] }
 0x31a   :  { %v3685_v10 = vadd.f32 %v3682_v46, %v3600_v1  ;;  %v3687_v29 = vadd.f32 %v3682_v46, %v3671_v9  ;;  %v3800_v46 = vld [vmem:[%s9305_s3 + $0x78] sm:$0x3f]  ;;  %v3799_v3 = vld [vmem:[%s9305_s3 + $0x70] sm:$0x3f]  ;;  %s6908_s3 = scalar_lea.vmem %s4377_s18, 32 }
 0x31b   :  { %v9222_v32 = vmax.f32 %v3684_v13, 0.0  ;;  %v9224_v54 = vmax.f32 %v3686_v0, 0.0  ;;  %v5382_v13 = vld [vmem:[%s9306_s4] ss:$0 sm:$0xff]  ;;  %p6909_p0 = scmp.ne.s32.totalorder %s4377_s18, %s6908_s3  ;;  %p6914_p2 = scmp.lt.s32.totalorder %s6908_s3, %s6908_s3 }
 0x31c   :  { %v3689_v57 = vmax.f32 %v3685_v10, 0.0  ;;  %v3691_v58 = vmax.f32 %v3687_v29, 0.0 }
 0x31d   :  { %v3736_v59 = vrot.slane %v9224_v54, 7  ;;  %v3706_v27 = vrot.slane %v9222_v32, 4  ;;  %v5376_v28 = vrot.slane %v9224_v54, 11  ;;  %v3694_v33 = vrot.slane %v9222_v32, 1  ;;  %p6915_p3 = por %p6914_p2, %p6913_p1 }
 0x31e   :  { %v3737_v17 = vrot.slane %v3691_v58, 7  ;;  %v3707_v55 = vrot.slane %v3689_v57, 4  ;;  %v5377_v56 = vrot.slane %v3691_v58, 11  ;;  %v3695_v45 = vrot.slane %v3689_v57, 1 }
 0x31f   :  { %v3769_v19 = vsel %vm3768_vm2, %v9222_v32, %v3736_v59  ;;  %v3777_v20 = vsel %vm3768_vm2, %v3706_v27, %v5376_v28  ;;  %v3711_v41 = vrot.slane %v3689_v57, 5  ;;  %v5379_v14 = vrot.slane %v3691_v58, 12  ;;  %p6916_p4 = pnand %p6915_p3, %p6909_p0 }
 0x320   :  { %v3770_v23 = vsel %vm3768_vm2, %v3689_v57, %v3737_v17  ;;  %v3778_v24 = vsel %vm3768_vm2, %v3707_v55, %v5377_v56  ;;  %v3772_v51 = vsel %vm3768_vm2, %v3695_v45, %v3691_v58  ;;  %v3771_v7 = vsel %vm3768_vm2, %v3694_v33, %v9224_v54 }
 0x321   :  { %3872 = vmatprep.mubr.f32.mxu1 %v3770_v23  ;;  %4152 = vmatprep.mubr.f32.mxu0 %v3778_v24  ;;  %v3780_v8 = vsel %vm3768_vm2, %v3711_v41, %v5379_v14  ;;  %v3710_v63 = vrot.slane %v9222_v32, 5  ;;  %v5378_v11 = vrot.slane %v9224_v54, 12  ;;  %v3699_v12 = vrot.slane %v3689_v57, 2 }
 0x322   :  { %3873 = vmatmul.mubr.f32.vlgmr.msra.gmra.mrb[2].mxu1 %v3769_v19  ;;  %4153 = vmatmul.mubr.f32.vlgmr.msra.gmra.mrb[2].mxu0 %v3777_v20  ;;  %v5373_v50 = vrot.slane %v3691_v58, 9  ;;  %v3715_v22 = vrot.slane %v3689_v57, 6  ;;  %v5381_v48 = vrot.slane %v3691_v58, 13  ;;  %v3698_v40 = vrot.slane %v9222_v32, 2 }
 0x323   :  { %3879 = vmatpush1.xpose.msra.mxu1 %v3787_v25  ;;  %3942 = vmatprep.mubr.f32.mxu1 %v3772_v51  ;;  %v3779_v35 = vsel %vm3768_vm2, %v3710_v63, %v5378_v11  ;;  %v5372_v36 = vrot.slane %v9224_v54, 9  ;;  %v3714_v37 = vrot.slane %v9222_v32, 6  ;;  %v5380_v52 = vrot.slane %v9224_v54, 13 }
 0x324   :  { %4222 = vmatprep.mubr.f32.mxu0 %v3780_v8  ;;  %4159 = vmatpush1.xpose.msra.mxu0 %v3795_v6  ;;  %v3774_v53 = vsel %vm3768_vm2, %v3699_v12, %v5373_v50  ;;  %v3782_v47 = vsel %vm3768_vm2, %v3715_v22, %v5381_v48  ;;  %v3703_v18 = vrot.slane %v3689_v57, 3  ;;  %v5375_v60 = vrot.slane %v3691_v58, 10 }
 0x325   :  { %3948 = vmatprep.subr.mxu1 %v3790_v62  ;;  %4228 = vmatprep.subr.mxu0 %v3798_v21  ;;  %v3773_v30 = vsel %vm3768_vm2, %v3698_v40, %v5372_v36  ;;  %v3781_v61 = vsel %vm3768_vm2, %v3714_v37, %v5380_v52  ;;  %v3719_v43 = vrot.slane %v3689_v57, 7  ;;  %v3751_v31 = vrot.slane %v3737_v17, 7 }
 0x326   :  { %v3776_v5 = vsel %vm3768_vm2, %v3703_v18, %v5375_v60  ;;  %v3702_v34 = vrot.slane %v9222_v32, 3  ;;  %v5374_v15 = vrot.slane %v9224_v54, 10  ;;  %v3718_v39 = vrot.slane %v9222_v32, 7 }
 0x327   :  { %v3784_v26 = vsel %vm3768_vm2, %v3719_v43, %v3751_v31  ;;  %v3750_v38 = vrot.slane %v3736_v59, 7 }
 0x328   :  { %v3775_v49 = vsel %vm3768_vm2, %v3702_v34, %v5374_v15 }
 0x329   :  { %v3783_v42 = vsel %vm3768_vm2, %v3718_v39, %v3750_v38 }
 0x32a   :  { %3943 = vmatmul.mubr.f32.vlgmr.msra.gmra.mrb[2].mxu1 %v3771_v7  ;;  %4223 = vmatmul.mubr.f32.vlgmr.msra.gmra.mrb[2].mxu0 %v3779_v35 }
 0x32b   :  { %3949 = vmatpush1.xpose.msra.mxu1 %v3789_v44  ;;  %4012 = vmatprep.mubr.f32.mxu1 %v3774_v53 }
 0x32c   :  { %4292 = vmatprep.mubr.f32.mxu0 %v3782_v47  ;;  %4229 = vmatpush1.xpose.msra.mxu0 %v3797_v4 }
 0x32d   :  { %4018 = vmatprep.subr.mxu1 %v3792_v16  ;;  %4298 = vmatprep.subr.mxu0 %v3800_v46 }
 0x332   :  { %4013 = vmatmul.mubr.f32.vlgmr.msra.gmra.mrb[2].mxu1 %v3773_v30  ;;  %4293 = vmatmul.mubr.f32.vlgmr.msra.gmra.mrb[2].mxu0 %v3781_v61 }
 0x333   :  { %4019 = vmatpush1.xpose.msra.mxu1 %v3791_v2  ;;  %4082 = vmatprep.mubr.f32.mxu1 %v3776_v5 }
 0x334   :  { %4362 = vmatprep.mubr.f32.mxu0 %v3784_v26  ;;  %4299 = vmatpush1.xpose.msra.mxu0 %v3799_v3 }
 0x33a   :  { %4083 = vmatmul.mubr.f32.vlgmr.msra.gmra.mrb[2].mxu1 %v3775_v49  ;;  %4363 = vmatmul.mubr.f32.vlgmr.msra.gmra.mrb[2].mxu0 %v3783_v42 }
 0x40d   :  { %v4084_v0 = vpop.f32.mrb[2].mxu1  ;;  %v4364_v1 = vpop.f32.mrb[2].mxu0 }
 0x40e   :  { %v6859_v9 = vadd.f32 %v5382_v13, %v4084_v0  ;;  %v4086_v10 = vpop.f32.mrb[3].mxu1  ;;  %v4366_v29 = vpop.f32.mrb[3].mxu0 }
 0x410   :  { %v6860_v32 = vadd.f32 %v6859_v9, %v4364_v1 }
 0x412   :  { %4369 = vst.msk [vmem:[#allocation2] sm:$0x3] %vm4368_vm3, %v6860_v32 }
 0x413   :  { %6919 = shalt.err (!%p6916_p4)
}
 0x414   :  { %s6920_s20 = scalar_lea.hbm %s9307_s5, 32 }
 0x415   :  { %p6921_p5 = scmp.ne.s32.totalorder %s9307_s5, %s6920_s20  ;;  %p6924_p6 = scmp.lt.u32.totalorder %s6920_s20, %s9307_s5 }
 0x417   :  { %p6926_p7 = pnand %p6924_p6, %p6921_p5 }
 0x419   :  { %6929 = shalt.err (!%p6926_p7)
}
 0x41a   :  { %4379 = dma.vmem_to_hbm [thread:$0]  %s4377_s18, 32, %s9307_s5, [#allocation3]  }
 0x41b   :  { %6930 = dma.done.wait [#allocation3], 32  }
 0x41c   :  { %6931 = vsyncadd [#allocation3], 4294967264 }
 0x41d   :  { %4383 = vsyncpa [#allocation3], 1 }

</bundles_post_ra>
